<compile_context>
chip_gen: v5e
topology: v5e:2x2
jax: 0.10.0
libtpu: 0.0.40
codegen_flags: <defaults>
</compile_context>

<pallas_src>
import jax
import jax.numpy as jnp
from jax import lax
from jax.experimental import pallas as pl
from jax.experimental.pallas import tpu as pltpu  # noqa: F401  (TPU backend)

# ---- model config (mirrors the args the PyTorch module reads) ---------------
INPUT_SIZE = 16     # args.input_size  (feature_len)
HIDDEN_SIZE = 32    # args.hidden_size
NUM_LAYERS = 2      # args.num_layers
NUM_CLASSES = 4     # args.num_classes
BATCH = 2
SEQ_LEN = 8

LANE = 128
GATES_PAD = LANE                 # 3*H = 96 padded to one full lane row
CLS_PAD = LANE                   # NUM_CLASSES padded to one full lane row
SLAB_LANES = 2 * GATES_PAD       # 256: wide enough for the block-diag Whh

assert 3 * HIDDEN_SIZE <= GATES_PAD and NUM_CLASSES <= CLS_PAD
assert NUM_LAYERS == 2           # fused kernel below is written for 2 layers

# ---- packed-slab row offsets (all 8-aligned) ---------------------------------
R_WIH1 = 0                                   # (INPUT_SIZE, 128)
R_WIH2 = R_WIH1 + INPUT_SIZE                 # (H, 128)
R_FCW = R_WIH2 + HIDDEN_SIZE                 # (H, 128)
R_BIH1 = R_FCW + HIDDEN_SIZE                 # (1, 128)
R_BHH1 = R_BIH1 + 8
R_BIH2 = R_BHH1 + 8
R_BHH2 = R_BIH2 + 8
R_FCB = R_BHH2 + 8
R_WHH = R_FCB + 8                            # (2H, 256) block-diag recurrent W
SLAB_ROWS = R_WHH + 2 * HIDDEN_SIZE          # 184


# --------------------------- fused forward kernel ----------------------------
def _fused_kernel(x_ref, len_ref, slab_ref, out_ref):
    TB, F = x_ref.shape                       # time-major flattened (T*B, F)
    B = len_ref.shape[0]
    T = TB // B
    H = HIDDEN_SIZE
    G = GATES_PAD

    # ---- one-time loads via static slices of the single packed slab ----
    wih1 = slab_ref[R_WIH1:R_WIH1 + F, 0:G]              # (F, 128)
    wih2 = slab_ref[R_WIH2:R_WIH2 + H, 0:G]              # (H, 128)
    fcw = slab_ref[R_FCW:R_FCW + H, 0:G]                 # (H, 128)
    bih1 = slab_ref[R_BIH1:R_BIH1 + 1, 0:G]              # (1, 128)
    fcb = slab_ref[R_FCB:R_FCB + 1, 0:G]                 # (1, 128)
    whh_blk = slab_ref[R_WHH:R_WHH + 2 * H, :]           # (2H, 256) block-diag

    # Hoisted loop-invariant broadcasts (JAX does not CSE broadcast_in_dim).
    bhh1 = jnp.broadcast_to(slab_ref[R_BHH1:R_BHH1 + 1, 0:G], (B, G))
    bih2 = jnp.broadcast_to(slab_ref[R_BIH2:R_BIH2 + 1, 0:G], (B, G))
    bhh2 = jnp.broadcast_to(slab_ref[R_BHH2:R_BHH2 + 1, 0:G], (B, G))
    lenm1 = jnp.broadcast_to(len_ref[...] - 1, (B, H))   # int32 (B, H)

    # Hoisted layer-1 input projection on time-major X (bih1 folded in):
    # one (T*B, F) @ (F, 128) MXU op; step t is rows [t*B, (t+1)*B).
    xw1 = jnp.dot(x_ref[...], wih1, preferred_element_type=jnp.float32) + bih1

    def gru_cell(gx, gh, h):
        # PyTorch gate order r, z, n stacked along the (padded) lane axis.
        r = jax.nn.sigmoid(gx[:, 0:H] + gh[:, 0:H])
        z = jax.nn.sigmoid(gx[:, H:2 * H] + gh[:, H:2 * H])
        n = jnp.tanh(gx[:, 2 * H:3 * H] + r * gh[:, 2 * H:3 * H])
        return (1.0 - z) * n + z * h

    h1 = jnp.zeros((B, H), jnp.float32)        # hidden_init_rand=False -> zeros
    h2 = jnp.zeros((B, H), jnp.float32)
    y = jnp.zeros((B, H), jnp.float32)

    # Fully unrolled static time loop (T=8); recurrent state stays in vregs.
    for t in range(T):
        # Both previous-state recurrent matmuls fused into ONE block-diag dot:
        # [h1 | h2] @ blkdiag(Whh1, Whh2) -> [gh1 | gh2]  (B, 256)
        ghh = jnp.dot(jnp.concatenate([h1, h2], axis=1), whh_blk,
                      preferred_element_type=jnp.float32)
        gh1 = ghh[:, 0:G] + bhh1
        gh2 = ghh[:, G:2 * G] + bhh2

        # ---- layer 1 (x-path hoisted above) ----
        h1 = gru_cell(xw1[t * B:(t + 1) * B, :], gh1, h1)

        # ---- layer 2 (input = layer-1 output of this step) ----
        gx2 = jnp.dot(h1, wih2, preferred_element_type=jnp.float32) + bih2
        h2 = gru_cell(gx2, gh2, h2)

        # last-valid-step gather: y[b] = h2[b] when t == lengths[b] - 1
        y = jnp.where(lenm1 == t, h2, y)

    # Dropout is identity (eval mode).
    # FC head: (B, H) @ (H, 128) lane-dense padded output (extra lanes are 0).
    out_ref[...] = jnp.dot(y, fcw, preferred_element_type=jnp.float32) + fcb


# --------------------------- parameter init ----------------------------------
def _pad_t(a, width=GATES_PAD):
    """Transpose (2-D) or row-ify (1-D) and zero-pad the lane axis to `width`."""
    a = a.T if a.ndim == 2 else a.reshape(1, -1)
    return jnp.pad(a, ((0, 0), (0, width - a.shape[-1])))


def init_params(key):
    H = HIDDEN_SIZE
    bound = 1.0 / jnp.sqrt(H)
    gru_k = []
    for l in range(NUM_LAYERS):
        in_sz = INPUT_SIZE if l == 0 else H
        key, k1, k2, k3, k4 = jax.random.split(key, 5)
        # PyTorch GRU layout: weight_ih (3H, in), weight_hh (3H, H), biases (3H,)
        w_ih = jax.random.uniform(k1, (3 * H, in_sz), jnp.float32, -bound, bound)
        w_hh = jax.random.uniform(k2, (3 * H, H), jnp.float32, -bound, bound)
        b_ih = jax.random.uniform(k3, (3 * H,), jnp.float32, -bound, bound)
        b_hh = jax.random.uniform(k4, (3 * H,), jnp.float32, -bound, bound)
        # kernel layout: transposed, gates stacked on lanes, padded to 128
        gru_k.append((_pad_t(w_ih), _pad_t(w_hh), _pad_t(b_ih), _pad_t(b_hh)))

    key, kf1, kf2 = jax.random.split(key, 3)
    # fc.weight: xavier_uniform_, (C, H); fc.bias: U(-1/sqrt(H), 1/sqrt(H))
    limit = jnp.sqrt(6.0 / (NUM_CLASSES + H))
    fc_w = jax.random.uniform(kf1, (NUM_CLASSES, H), jnp.float32, -limit, limit)
    fc_b = jax.random.uniform(kf2, (NUM_CLASSES,), jnp.float32, -bound, bound)
    fcw_k = _pad_t(fc_w, CLS_PAD)                    # (H, 128)
    fcb_k = _pad_t(fc_b, CLS_PAD)                    # (1, 128)

    # ---- single packed slab (SLAB_ROWS, 256) -> one weight DMA per call ----
    (wih1, whh1, bih1, bhh1), (wih2, whh2, bih2, bhh2) = gru_k
    G = GATES_PAD
    slab = jnp.zeros((SLAB_ROWS, SLAB_LANES), jnp.float32)
    slab = slab.at[R_WIH1:R_WIH1 + INPUT_SIZE, 0:G].set(wih1)
    slab = slab.at[R_WIH2:R_WIH2 + H, 0:G].set(wih2)
    slab = slab.at[R_FCW:R_FCW + H, 0:G].set(fcw_k)
    slab = slab.at[R_BIH1, 0:G].set(bih1[0])
    slab = slab.at[R_BHH1, 0:G].set(bhh1[0])
    slab = slab.at[R_BIH2, 0:G].set(bih2[0])
    slab = slab.at[R_BHH2, 0:G].set(bhh2[0])
    slab = slab.at[R_FCB, 0:G].set(fcb_k[0])
    # block-diagonal recurrent weight: [h1|h2] @ blkdiag(Whh1, Whh2)
    slab = slab.at[R_WHH:R_WHH + H, 0:G].set(whh1)
    slab = slab.at[R_WHH + H:R_WHH + 2 * H, G:2 * G].set(whh2)

    return {"slab": slab, "gru": gru_k, "fc_w": fcw_k, "fc_b": fcb_k}


# ------------------------------- forward -------------------------------------
@jax.jit
def speech_pace_forward(params, X, lengths):
    """X: (B, T, F) float32 batch-first; lengths: (B,) int in [1, T]. -> (B, C).

    Note: like torch pack_padded_sequence, lengths outside [1, T] are invalid;
    here such rows would silently keep y = 0 instead of raising.
    """
    B, T, F = X.shape
    # single wrapper transpose to time-major, flattened so step t of the
    # hoisted input projection is a contiguous sublane slice.
    x_tm = jnp.swapaxes(X, 0, 1).reshape(T * B, F)
    len2d = lengths.astype(jnp.int32).reshape(B, 1)
    out_pad = pl.pallas_call(
        _fused_kernel,
        out_shape=jax.ShapeDtypeStruct((B, CLS_PAD), jnp.float32),
    )(x_tm, len2d, params["slab"])
    return out_pad[:, :NUM_CLASSES]


# -------------------------- pure-JAX reference --------------------------------
def ref_forward(params, X, lengths):
    B, T, _ = X.shape
    H = HIDDEN_SIZE
    seq = jnp.swapaxes(X, 0, 1)                    # (T, B, F)
    for (wih, whh, bih, bhh) in params["gru"]:
        def step(h, x_t, wih=wih, whh=whh, bih=bih, bhh=bhh):
            gx = x_t @ wih[:, :3 * H] + bih[:, :3 * H]
            gh = h @ whh[:, :3 * H] + bhh[:, :3 * H]
            r = jax.nn.sigmoid(gx[:, :H] + gh[:, :H])
            z = jax.nn.sigmoid(gx[:, H:2 * H] + gh[:, H:2 * H])
            n = jnp.tanh(gx[:, 2 * H:] + r * gh[:, 2 * H:])
            h_new = (1.0 - z) * n + z * h
            return h_new, h_new

        h0 = jnp.zeros((B, H), jnp.float32)
        _, seq = lax.scan(step, h0, seq)
    out = jnp.swapaxes(seq, 0, 1)                  # (B, T, H)
    idx = (lengths.astype(jnp.int32) - 1)[:, None, None]
    y = jnp.take_along_axis(out, idx, axis=1)[:, 0, :]
    return y @ params["fc_w"][:, :NUM_CLASSES] + params["fc_b"][:, :NUM_CLASSES]


# --------------------------------- main ---------------------------------------
if __name__ == "__main__":
    key = jax.random.PRNGKey(0)
    kp, kx = jax.random.split(key)
    params = init_params(kp)

    X = jax.random.normal(kx, (BATCH, SEQ_LEN, INPUT_SIZE), jnp.float32)
    # pack_padded_sequence expects lengths sorted descending; all in [1, T]
    lengths = jnp.array([SEQ_LEN, 5], dtype=jnp.int32)

    y = jax.block_until_ready(speech_pace_forward(params, X, lengths))
    y_ref = jax.block_until_ready(ref_forward(params, X, lengths))

    assert y.shape == (BATCH, NUM_CLASSES)
    assert jnp.allclose(y, y_ref, atol=1e-5, rtol=1e-5), (y, y_ref)

    print("KERNEL_OK")
</pallas_src>

<mosaic_0001>
module attributes {stable_mosaic.version = 11 : i64} {
  func.func @_fused_kernel(%arg0: memref<16x16xf32, #tpu.memory_space<vmem>>, %arg1: memref<2x1xi32, #tpu.memory_space<vmem>>, %arg2: memref<184x256xf32, #tpu.memory_space<vmem>>, %arg3: memref<2x128xf32, #tpu.memory_space<vmem>>) attributes {dimension_semantics = [], scalar_prefetch = 0 : i64, scratch_operands = 0 : i64, tpu.core_type = #tpu.core_type<tc>} {
    %c0 = arith.constant 0 : index
    %c0_0 = arith.constant 0 : index
    %0 = vector.load %arg2[%c0, %c0_0] : memref<184x256xf32, #tpu.memory_space<vmem>>, vector<16x128xf32>
    %c16 = arith.constant 16 : index
    %c0_1 = arith.constant 0 : index
    %1 = vector.load %arg2[%c16, %c0_1] : memref<184x256xf32, #tpu.memory_space<vmem>>, vector<32x128xf32>
    %c48 = arith.constant 48 : index
    %c0_2 = arith.constant 0 : index
    %2 = vector.load %arg2[%c48, %c0_2] : memref<184x256xf32, #tpu.memory_space<vmem>>, vector<32x128xf32>
    %c80 = arith.constant 80 : index
    %c0_3 = arith.constant 0 : index
    %3 = vector.load %arg2[%c80, %c0_3] : memref<184x256xf32, #tpu.memory_space<vmem>>, vector<1x128xf32>
    %c112 = arith.constant 112 : index
    %c0_4 = arith.constant 0 : index
    %4 = vector.load %arg2[%c112, %c0_4] : memref<184x256xf32, #tpu.memory_space<vmem>>, vector<1x128xf32>
    %c120 = arith.constant 120 : index
    %c0_5 = arith.constant 0 : index
    %5 = vector.load %arg2[%c120, %c0_5] : memref<184x256xf32, #tpu.memory_space<vmem>>, vector<64x256xf32>
    %c88 = arith.constant 88 : index
    %c0_6 = arith.constant 0 : index
    %6 = vector.load %arg2[%c88, %c0_6] : memref<184x256xf32, #tpu.memory_space<vmem>>, vector<1x128xf32>
    %7 = vector.shape_cast %6 : vector<1x128xf32> to vector<1x128xf32>
    %8 = vector.broadcast %7 : vector<1x128xf32> to vector<2x128xf32>
    %c96 = arith.constant 96 : index
    %c0_7 = arith.constant 0 : index
    %9 = vector.load %arg2[%c96, %c0_7] : memref<184x256xf32, #tpu.memory_space<vmem>>, vector<1x128xf32>
    %10 = vector.shape_cast %9 : vector<1x128xf32> to vector<1x128xf32>
    %11 = vector.broadcast %10 : vector<1x128xf32> to vector<2x128xf32>
    %c104 = arith.constant 104 : index
    %c0_8 = arith.constant 0 : index
    %12 = vector.load %arg2[%c104, %c0_8] : memref<184x256xf32, #tpu.memory_space<vmem>>, vector<1x128xf32>
    %13 = vector.shape_cast %12 : vector<1x128xf32> to vector<1x128xf32>
    %14 = vector.broadcast %13 : vector<1x128xf32> to vector<2x128xf32>
    %c0_9 = arith.constant 0 : index
    %c0_10 = arith.constant 0 : index
    %15 = vector.load %arg1[%c0_9, %c0_10] : memref<2x1xi32, #tpu.memory_space<vmem>>, vector<2x1xi32>
    %c1_i32 = arith.constant 1 : i32
    %16 = vector.broadcast %c1_i32 : i32 to vector<2x1xi32>
    %17 = arith.subi %15, %16 : vector<2x1xi32>
    %18 = vector.shape_cast %17 : vector<2x1xi32> to vector<2x1xi32>
    %19 = vector.broadcast %18 : vector<2x1xi32> to vector<2x32xi32>
    %c0_11 = arith.constant 0 : index
    %c0_12 = arith.constant 0 : index
    %20 = vector.load %arg0[%c0_11, %c0_12] : memref<16x16xf32, #tpu.memory_space<vmem>>, vector<16x16xf32>
    %cst = arith.constant dense<0.000000e+00> : vector<16x128xf32>
    %21 = tpu.matmul %20, %0, %cst {dimension_numbers = #tpu.dot_dimension_numbers<[1], [0], [0], [1], [0, 0, 1, 1], [], []>} : vector<16x16xf32>, vector<16x128xf32>, vector<16x128xf32> -> vector<16x128xf32>
    %22 = vector.broadcast %3 : vector<1x128xf32> to vector<16x128xf32>
    %23 = arith.addf %21, %22 : vector<16x128xf32>
    %cst_13 = arith.constant 0.000000e+00 : f32
    %24 = vector.broadcast %cst_13 : f32 to vector<2x32xf32>
    %cst_14 = arith.constant 0.000000e+00 : f32
    %25 = vector.broadcast %cst_14 : f32 to vector<2x32xf32>
    %cst_15 = arith.constant 0.000000e+00 : f32
    %26 = vector.broadcast %cst_15 : f32 to vector<2x32xf32>
    %27 = tpu.concatenate %24, %25 in 1 : vector<2x32xf32>, vector<2x32xf32> -> vector<2x64xf32>
    %cst_16 = arith.constant dense<0.000000e+00> : vector<2x256xf32>
    %28 = tpu.matmul %27, %5, %cst_16 {dimension_numbers = #tpu.dot_dimension_numbers<[1], [0], [0], [1], [0, 0, 1, 1], [], []>} : vector<2x64xf32>, vector<64x256xf32>, vector<2x256xf32> -> vector<2x256xf32>
    %29 = vector.extract_strided_slice %28 {offsets = [0, 0], sizes = [2, 128], strides = [1, 1]} : vector<2x256xf32> to vector<2x128xf32>
    %30 = arith.addf %29, %8 : vector<2x128xf32>
    %31 = vector.extract_strided_slice %28 {offsets = [0, 128], sizes = [2, 128], strides = [1, 1]} : vector<2x256xf32> to vector<2x128xf32>
    %32 = arith.addf %31, %14 : vector<2x128xf32>
    %33 = vector.extract_strided_slice %23 {offsets = [0, 0], sizes = [2, 128], strides = [1, 1]} : vector<16x128xf32> to vector<2x128xf32>
    %34 = vector.extract_strided_slice %33 {offsets = [0, 0], sizes = [2, 32], strides = [1, 1]} : vector<2x128xf32> to vector<2x32xf32>
    %35 = vector.extract_strided_slice %30 {offsets = [0, 0], sizes = [2, 32], strides = [1, 1]} : vector<2x128xf32> to vector<2x32xf32>
    %36 = arith.addf %34, %35 : vector<2x32xf32>
    %37 = arith.negf %36 : vector<2x32xf32>
    %38 = math.exp %37 : vector<2x32xf32>
    %cst_17 = arith.constant 1.000000e+00 : f32
    %39 = vector.broadcast %cst_17 : f32 to vector<2x32xf32>
    %40 = arith.addf %39, %38 : vector<2x32xf32>
    %41 = arith.divf %39, %40 : vector<2x32xf32>
    %42 = vector.extract_strided_slice %33 {offsets = [0, 32], sizes = [2, 32], strides = [1, 1]} : vector<2x128xf32> to vector<2x32xf32>
    %43 = vector.extract_strided_slice %30 {offsets = [0, 32], sizes = [2, 32], strides = [1, 1]} : vector<2x128xf32> to vector<2x32xf32>
    %44 = arith.addf %42, %43 : vector<2x32xf32>
    %45 = arith.negf %44 : vector<2x32xf32>
    %46 = math.exp %45 : vector<2x32xf32>
    %cst_18 = arith.constant 1.000000e+00 : f32
    %47 = vector.broadcast %cst_18 : f32 to vector<2x32xf32>
    %48 = arith.addf %47, %46 : vector<2x32xf32>
    %49 = arith.divf %47, %48 : vector<2x32xf32>
    %50 = vector.extract_strided_slice %33 {offsets = [0, 64], sizes = [2, 32], strides = [1, 1]} : vector<2x128xf32> to vector<2x32xf32>
    %51 = vector.extract_strided_slice %30 {offsets = [0, 64], sizes = [2, 32], strides = [1, 1]} : vector<2x128xf32> to vector<2x32xf32>
    %52 = arith.mulf %41, %51 : vector<2x32xf32>
    %53 = arith.addf %50, %52 : vector<2x32xf32>
    %54 = math.tanh %53 : vector<2x32xf32>
    %cst_19 = arith.constant 1.000000e+00 : f32
    %55 = vector.broadcast %cst_19 : f32 to vector<2x32xf32>
    %56 = arith.subf %55, %49 : vector<2x32xf32>
    %57 = arith.mulf %56, %54 : vector<2x32xf32>
    %58 = arith.mulf %49, %24 : vector<2x32xf32>
    %59 = arith.addf %57, %58 : vector<2x32xf32>
    %cst_20 = arith.constant dense<0.000000e+00> : vector<2x128xf32>
    %60 = tpu.matmul %59, %1, %cst_20 {dimension_numbers = #tpu.dot_dimension_numbers<[1], [0], [0], [1], [0, 0, 1, 1], [], []>} : vector<2x32xf32>, vector<32x128xf32>, vector<2x128xf32> -> vector<2x128xf32>
    %61 = arith.addf %60, %11 : vector<2x128xf32>
    %62 = vector.extract_strided_slice %61 {offsets = [0, 0], sizes = [2, 32], strides = [1, 1]} : vector<2x128xf32> to vector<2x32xf32>
    %63 = vector.extract_strided_slice %32 {offsets = [0, 0], sizes = [2, 32], strides = [1, 1]} : vector<2x128xf32> to vector<2x32xf32>
    %64 = arith.addf %62, %63 : vector<2x32xf32>
    %65 = arith.negf %64 : vector<2x32xf32>
    %66 = math.exp %65 : vector<2x32xf32>
    %cst_21 = arith.constant 1.000000e+00 : f32
    %67 = vector.broadcast %cst_21 : f32 to vector<2x32xf32>
    %68 = arith.addf %67, %66 : vector<2x32xf32>
    %69 = arith.divf %67, %68 : vector<2x32xf32>
    %70 = vector.extract_strided_slice %61 {offsets = [0, 32], sizes = [2, 32], strides = [1, 1]} : vector<2x128xf32> to vector<2x32xf32>
    %71 = vector.extract_strided_slice %32 {offsets = [0, 32], sizes = [2, 32], strides = [1, 1]} : vector<2x128xf32> to vector<2x32xf32>
    %72 = arith.addf %70, %71 : vector<2x32xf32>
    %73 = arith.negf %72 : vector<2x32xf32>
    %74 = math.exp %73 : vector<2x32xf32>
    %cst_22 = arith.constant 1.000000e+00 : f32
    %75 = vector.broadcast %cst_22 : f32 to vector<2x32xf32>
    %76 = arith.addf %75, %74 : vector<2x32xf32>
    %77 = arith.divf %75, %76 : vector<2x32xf32>
    %78 = vector.extract_strided_slice %61 {offsets = [0, 64], sizes = [2, 32], strides = [1, 1]} : vector<2x128xf32> to vector<2x32xf32>
    %79 = vector.extract_strided_slice %32 {offsets = [0, 64], sizes = [2, 32], strides = [1, 1]} : vector<2x128xf32> to vector<2x32xf32>
    %80 = arith.mulf %69, %79 : vector<2x32xf32>
    %81 = arith.addf %78, %80 : vector<2x32xf32>
    %82 = math.tanh %81 : vector<2x32xf32>
    %cst_23 = arith.constant 1.000000e+00 : f32
    %83 = vector.broadcast %cst_23 : f32 to vector<2x32xf32>
    %84 = arith.subf %83, %77 : vector<2x32xf32>
    %85 = arith.mulf %84, %82 : vector<2x32xf32>
    %86 = arith.mulf %77, %25 : vector<2x32xf32>
    %87 = arith.addf %85, %86 : vector<2x32xf32>
    %c0_i32 = arith.constant 0 : i32
    %88 = vector.broadcast %c0_i32 : i32 to vector<2x32xi32>
    %89 = arith.cmpi eq, %19, %88 : vector<2x32xi32>
    %90 = arith.select %89, %87, %26 : vector<2x32xi1>, vector<2x32xf32>
    %91 = tpu.concatenate %59, %87 in 1 : vector<2x32xf32>, vector<2x32xf32> -> vector<2x64xf32>
    %cst_24 = arith.constant dense<0.000000e+00> : vector<2x256xf32>
    %92 = tpu.matmul %91, %5, %cst_24 {dimension_numbers = #tpu.dot_dimension_numbers<[1], [0], [0], [1], [0, 0, 1, 1], [], []>} : vector<2x64xf32>, vector<64x256xf32>, vector<2x256xf32> -> vector<2x256xf32>
    %93 = vector.extract_strided_slice %92 {offsets = [0, 0], sizes = [2, 128], strides = [1, 1]} : vector<2x256xf32> to vector<2x128xf32>
    %94 = arith.addf %93, %8 : vector<2x128xf32>
    %95 = vector.extract_strided_slice %92 {offsets = [0, 128], sizes = [2, 128], strides = [1, 1]} : vector<2x256xf32> to vector<2x128xf32>
    %96 = arith.addf %95, %14 : vector<2x128xf32>
    %97 = vector.extract_strided_slice %23 {offsets = [2, 0], sizes = [2, 128], strides = [1, 1]} : vector<16x128xf32> to vector<2x128xf32>
    %98 = vector.extract_strided_slice %97 {offsets = [0, 0], sizes = [2, 32], strides = [1, 1]} : vector<2x128xf32> to vector<2x32xf32>
    %99 = vector.extract_strided_slice %94 {offsets = [0, 0], sizes = [2, 32], strides = [1, 1]} : vector<2x128xf32> to vector<2x32xf32>
    %100 = arith.addf %98, %99 : vector<2x32xf32>
    %101 = arith.negf %100 : vector<2x32xf32>
    %102 = math.exp %101 : vector<2x32xf32>
    %cst_25 = arith.constant 1.000000e+00 : f32
    %103 = vector.broadcast %cst_25 : f32 to vector<2x32xf32>
    %104 = arith.addf %103, %102 : vector<2x32xf32>
    %105 = arith.divf %103, %104 : vector<2x32xf32>
    %106 = vector.extract_strided_slice %97 {offsets = [0, 32], sizes = [2, 32], strides = [1, 1]} : vector<2x128xf32> to vector<2x32xf32>
    %107 = vector.extract_strided_slice %94 {offsets = [0, 32], sizes = [2, 32], strides = [1, 1]} : vector<2x128xf32> to vector<2x32xf32>
    %108 = arith.addf %106, %107 : vector<2x32xf32>
    %109 = arith.negf %108 : vector<2x32xf32>
    %110 = math.exp %109 : vector<2x32xf32>
    %cst_26 = arith.constant 1.000000e+00 : f32
    %111 = vector.broadcast %cst_26 : f32 to vector<2x32xf32>
    %112 = arith.addf %111, %110 : vector<2x32xf32>
    %113 = arith.divf %111, %112 : vector<2x32xf32>
    %114 = vector.extract_strided_slice %97 {offsets = [0, 64], sizes = [2, 32], strides = [1, 1]} : vector<2x128xf32> to vector<2x32xf32>
    %115 = vector.extract_strided_slice %94 {offsets = [0, 64], sizes = [2, 32], strides = [1, 1]} : vector<2x128xf32> to vector<2x32xf32>
    %116 = arith.mulf %105, %115 : vector<2x32xf32>
    %117 = arith.addf %114, %116 : vector<2x32xf32>
    %118 = math.tanh %117 : vector<2x32xf32>
    %cst_27 = arith.constant 1.000000e+00 : f32
    %119 = vector.broadcast %cst_27 : f32 to vector<2x32xf32>
    %120 = arith.subf %119, %113 : vector<2x32xf32>
    %121 = arith.mulf %120, %118 : vector<2x32xf32>
    %122 = arith.mulf %113, %59 : vector<2x32xf32>
    %123 = arith.addf %121, %122 : vector<2x32xf32>
    %cst_28 = arith.constant dense<0.000000e+00> : vector<2x128xf32>
    %124 = tpu.matmul %123, %1, %cst_28 {dimension_numbers = #tpu.dot_dimension_numbers<[1], [0], [0], [1], [0, 0, 1, 1], [], []>} : vector<2x32xf32>, vector<32x128xf32>, vector<2x128xf32> -> vector<2x128xf32>
    %125 = arith.addf %124, %11 : vector<2x128xf32>
    %126 = vector.extract_strided_slice %125 {offsets = [0, 0], sizes = [2, 32], strides = [1, 1]} : vector<2x128xf32> to vector<2x32xf32>
    %127 = vector.extract_strided_slice %96 {offsets = [0, 0], sizes = [2, 32], strides = [1, 1]} : vector<2x128xf32> to vector<2x32xf32>
    %128 = arith.addf %126, %127 : vector<2x32xf32>
    %129 = arith.negf %128 : vector<2x32xf32>
    %130 = math.exp %129 : vector<2x32xf32>
    %cst_29 = arith.constant 1.000000e+00 : f32
    %131 = vector.broadcast %cst_29 : f32 to vector<2x32xf32>
    %132 = arith.addf %131, %130 : vector<2x32xf32>
    %133 = arith.divf %131, %132 : vector<2x32xf32>
    %134 = vector.extract_strided_slice %125 {offsets = [0, 32], sizes = [2, 32], strides = [1, 1]} : vector<2x128xf32> to vector<2x32xf32>
    %135 = vector.extract_strided_slice %96 {offsets = [0, 32], sizes = [2, 32], strides = [1, 1]} : vector<2x128xf32> to vector<2x32xf32>
    %136 = arith.addf %134, %135 : vector<2x32xf32>
    %137 = arith.negf %136 : vector<2x32xf32>
    %138 = math.exp %137 : vector<2x32xf32>
    %cst_30 = arith.constant 1.000000e+00 : f32
    %139 = vector.broadcast %cst_30 : f32 to vector<2x32xf32>
    %140 = arith.addf %139, %138 : vector<2x32xf32>
    %141 = arith.divf %139, %140 : vector<2x32xf32>
    %142 = vector.extract_strided_slice %125 {offsets = [0, 64], sizes = [2, 32], strides = [1, 1]} : vector<2x128xf32> to vector<2x32xf32>
    %143 = vector.extract_strided_slice %96 {offsets = [0, 64], sizes = [2, 32], strides = [1, 1]} : vector<2x128xf32> to vector<2x32xf32>
    %144 = arith.mulf %133, %143 : vector<2x32xf32>
    %145 = arith.addf %142, %144 : vector<2x32xf32>
    %146 = math.tanh %145 : vector<2x32xf32>
    %cst_31 = arith.constant 1.000000e+00 : f32
    %147 = vector.broadcast %cst_31 : f32 to vector<2x32xf32>
    %148 = arith.subf %147, %141 : vector<2x32xf32>
    %149 = arith.mulf %148, %146 : vector<2x32xf32>
    %150 = arith.mulf %141, %87 : vector<2x32xf32>
    %151 = arith.addf %149, %150 : vector<2x32xf32>
    %c1_i32_32 = arith.constant 1 : i32
    %152 = vector.broadcast %c1_i32_32 : i32 to vector<2x32xi32>
    %153 = arith.cmpi eq, %19, %152 : vector<2x32xi32>
    %154 = arith.select %153, %151, %90 : vector<2x32xi1>, vector<2x32xf32>
    %155 = tpu.concatenate %123, %151 in 1 : vector<2x32xf32>, vector<2x32xf32> -> vector<2x64xf32>
    %cst_33 = arith.constant dense<0.000000e+00> : vector<2x256xf32>
    %156 = tpu.matmul %155, %5, %cst_33 {dimension_numbers = #tpu.dot_dimension_numbers<[1], [0], [0], [1], [0, 0, 1, 1], [], []>} : vector<2x64xf32>, vector<64x256xf32>, vector<2x256xf32> -> vector<2x256xf32>
    %157 = vector.extract_strided_slice %156 {offsets = [0, 0], sizes = [2, 128], strides = [1, 1]} : vector<2x256xf32> to vector<2x128xf32>
    %158 = arith.addf %157, %8 : vector<2x128xf32>
    %159 = vector.extract_strided_slice %156 {offsets = [0, 128], sizes = [2, 128], strides = [1, 1]} : vector<2x256xf32> to vector<2x128xf32>
    %160 = arith.addf %159, %14 : vector<2x128xf32>
    %161 = vector.extract_strided_slice %23 {offsets = [4, 0], sizes = [2, 128], strides = [1, 1]} : vector<16x128xf32> to vector<2x128xf32>
    %162 = vector.extract_strided_slice %161 {offsets = [0, 0], sizes = [2, 32], strides = [1, 1]} : vector<2x128xf32> to vector<2x32xf32>
    %163 = vector.extract_strided_slice %158 {offsets = [0, 0], sizes = [2, 32], strides = [1, 1]} : vector<2x128xf32> to vector<2x32xf32>
    %164 = arith.addf %162, %163 : vector<2x32xf32>
    %165 = arith.negf %164 : vector<2x32xf32>
    %166 = math.exp %165 : vector<2x32xf32>
    %cst_34 = arith.constant 1.000000e+00 : f32
    %167 = vector.broadcast %cst_34 : f32 to vector<2x32xf32>
    %168 = arith.addf %167, %166 : vector<2x32xf32>
    %169 = arith.divf %167, %168 : vector<2x32xf32>
    %170 = vector.extract_strided_slice %161 {offsets = [0, 32], sizes = [2, 32], strides = [1, 1]} : vector<2x128xf32> to vector<2x32xf32>
    %171 = vector.extract_strided_slice %158 {offsets = [0, 32], sizes = [2, 32], strides = [1, 1]} : vector<2x128xf32> to vector<2x32xf32>
    %172 = arith.addf %170, %171 : vector<2x32xf32>
    %173 = arith.negf %172 : vector<2x32xf32>
    %174 = math.exp %173 : vector<2x32xf32>
    %cst_35 = arith.constant 1.000000e+00 : f32
    %175 = vector.broadcast %cst_35 : f32 to vector<2x32xf32>
    %176 = arith.addf %175, %174 : vector<2x32xf32>
    %177 = arith.divf %175, %176 : vector<2x32xf32>
    %178 = vector.extract_strided_slice %161 {offsets = [0, 64], sizes = [2, 32], strides = [1, 1]} : vector<2x128xf32> to vector<2x32xf32>
    %179 = vector.extract_strided_slice %158 {offsets = [0, 64], sizes = [2, 32], strides = [1, 1]} : vector<2x128xf32> to vector<2x32xf32>
    %180 = arith.mulf %169, %179 : vector<2x32xf32>
    %181 = arith.addf %178, %180 : vector<2x32xf32>
    %182 = math.tanh %181 : vector<2x32xf32>
    %cst_36 = arith.constant 1.000000e+00 : f32
    %183 = vector.broadcast %cst_36 : f32 to vector<2x32xf32>
    %184 = arith.subf %183, %177 : vector<2x32xf32>
    %185 = arith.mulf %184, %182 : vector<2x32xf32>
    %186 = arith.mulf %177, %123 : vector<2x32xf32>
    %187 = arith.addf %185, %186 : vector<2x32xf32>
    %cst_37 = arith.constant dense<0.000000e+00> : vector<2x128xf32>
    %188 = tpu.matmul %187, %1, %cst_37 {dimension_numbers = #tpu.dot_dimension_numbers<[1], [0], [0], [1], [0, 0, 1, 1], [], []>} : vector<2x32xf32>, vector<32x128xf32>, vector<2x128xf32> -> vector<2x128xf32>
    %189 = arith.addf %188, %11 : vector<2x128xf32>
    %190 = vector.extract_strided_slice %189 {offsets = [0, 0], sizes = [2, 32], strides = [1, 1]} : vector<2x128xf32> to vector<2x32xf32>
    %191 = vector.extract_strided_slice %160 {offsets = [0, 0], sizes = [2, 32], strides = [1, 1]} : vector<2x128xf32> to vector<2x32xf32>
    %192 = arith.addf %190, %191 : vector<2x32xf32>
    %193 = arith.negf %192 : vector<2x32xf32>
    %194 = math.exp %193 : vector<2x32xf32>
    %cst_38 = arith.constant 1.000000e+00 : f32
    %195 = vector.broadcast %cst_38 : f32 to vector<2x32xf32>
    %196 = arith.addf %195, %194 : vector<2x32xf32>
    %197 = arith.divf %195, %196 : vector<2x32xf32>
    %198 = vector.extract_strided_slice %189 {offsets = [0, 32], sizes = [2, 32], strides = [1, 1]} : vector<2x128xf32> to vector<2x32xf32>
    %199 = vector.extract_strided_slice %160 {offsets = [0, 32], sizes = [2, 32], strides = [1, 1]} : vector<2x128xf32> to vector<2x32xf32>
    %200 = arith.addf %198, %199 : vector<2x32xf32>
    %201 = arith.negf %200 : vector<2x32xf32>
    %202 = math.exp %201 : vector<2x32xf32>
    %cst_39 = arith.constant 1.000000e+00 : f32
    %203 = vector.broadcast %cst_39 : f32 to vector<2x32xf32>
    %204 = arith.addf %203, %202 : vector<2x32xf32>
    %205 = arith.divf %203, %204 : vector<2x32xf32>
    %206 = vector.extract_strided_slice %189 {offsets = [0, 64], sizes = [2, 32], strides = [1, 1]} : vector<2x128xf32> to vector<2x32xf32>
    %207 = vector.extract_strided_slice %160 {offsets = [0, 64], sizes = [2, 32], strides = [1, 1]} : vector<2x128xf32> to vector<2x32xf32>
    %208 = arith.mulf %197, %207 : vector<2x32xf32>
    %209 = arith.addf %206, %208 : vector<2x32xf32>
    %210 = math.tanh %209 : vector<2x32xf32>
    %cst_40 = arith.constant 1.000000e+00 : f32
    %211 = vector.broadcast %cst_40 : f32 to vector<2x32xf32>
    %212 = arith.subf %211, %205 : vector<2x32xf32>
    %213 = arith.mulf %212, %210 : vector<2x32xf32>
    %214 = arith.mulf %205, %151 : vector<2x32xf32>
    %215 = arith.addf %213, %214 : vector<2x32xf32>
    %c2_i32 = arith.constant 2 : i32
    %216 = vector.broadcast %c2_i32 : i32 to vector<2x32xi32>
    %217 = arith.cmpi eq, %19, %216 : vector<2x32xi32>
    %218 = arith.select %217, %215, %154 : vector<2x32xi1>, vector<2x32xf32>
    %219 = tpu.concatenate %187, %215 in 1 : vector<2x32xf32>, vector<2x32xf32> -> vector<2x64xf32>
    %cst_41 = arith.constant dense<0.000000e+00> : vector<2x256xf32>
    %220 = tpu.matmul %219, %5, %cst_41 {dimension_numbers = #tpu.dot_dimension_numbers<[1], [0], [0], [1], [0, 0, 1, 1], [], []>} : vector<2x64xf32>, vector<64x256xf32>, vector<2x256xf32> -> vector<2x256xf32>
    %221 = vector.extract_strided_slice %220 {offsets = [0, 0], sizes = [2, 128], strides = [1, 1]} : vector<2x256xf32> to vector<2x128xf32>
    %222 = arith.addf %221, %8 : vector<2x128xf32>
    %223 = vector.extract_strided_slice %220 {offsets = [0, 128], sizes = [2, 128], strides = [1, 1]} : vector<2x256xf32> to vector<2x128xf32>
    %224 = arith.addf %223, %14 : vector<2x128xf32>
    %225 = vector.extract_strided_slice %23 {offsets = [6, 0], sizes = [2, 128], strides = [1, 1]} : vector<16x128xf32> to vector<2x128xf32>
    %226 = vector.extract_strided_slice %225 {offsets = [0, 0], sizes = [2, 32], strides = [1, 1]} : vector<2x128xf32> to vector<2x32xf32>
    %227 = vector.extract_strided_slice %222 {offsets = [0, 0], sizes = [2, 32], strides = [1, 1]} : vector<2x128xf32> to vector<2x32xf32>
    %228 = arith.addf %226, %227 : vector<2x32xf32>
    %229 = arith.negf %228 : vector<2x32xf32>
    %230 = math.exp %229 : vector<2x32xf32>
    %cst_42 = arith.constant 1.000000e+00 : f32
    %231 = vector.broadcast %cst_42 : f32 to vector<2x32xf32>
    %232 = arith.addf %231, %230 : vector<2x32xf32>
    %233 = arith.divf %231, %232 : vector<2x32xf32>
    %234 = vector.extract_strided_slice %225 {offsets = [0, 32], sizes = [2, 32], strides = [1, 1]} : vector<2x128xf32> to vector<2x32xf32>
    %235 = vector.extract_strided_slice %222 {offsets = [0, 32], sizes = [2, 32], strides = [1, 1]} : vector<2x128xf32> to vector<2x32xf32>
    %236 = arith.addf %234, %235 : vector<2x32xf32>
    %237 = arith.negf %236 : vector<2x32xf32>
    %238 = math.exp %237 : vector<2x32xf32>
    %cst_43 = arith.constant 1.000000e+00 : f32
    %239 = vector.broadcast %cst_43 : f32 to vector<2x32xf32>
    %240 = arith.addf %239, %238 : vector<2x32xf32>
    %241 = arith.divf %239, %240 : vector<2x32xf32>
    %242 = vector.extract_strided_slice %225 {offsets = [0, 64], sizes = [2, 32], strides = [1, 1]} : vector<2x128xf32> to vector<2x32xf32>
    %243 = vector.extract_strided_slice %222 {offsets = [0, 64], sizes = [2, 32], strides = [1, 1]} : vector<2x128xf32> to vector<2x32xf32>
    %244 = arith.mulf %233, %243 : vector<2x32xf32>
    %245 = arith.addf %242, %244 : vector<2x32xf32>
    %246 = math.tanh %245 : vector<2x32xf32>
    %cst_44 = arith.constant 1.000000e+00 : f32
    %247 = vector.broadcast %cst_44 : f32 to vector<2x32xf32>
    %248 = arith.subf %247, %241 : vector<2x32xf32>
    %249 = arith.mulf %248, %246 : vector<2x32xf32>
    %250 = arith.mulf %241, %187 : vector<2x32xf32>
    %251 = arith.addf %249, %250 : vector<2x32xf32>
    %cst_45 = arith.constant dense<0.000000e+00> : vector<2x128xf32>
    %252 = tpu.matmul %251, %1, %cst_45 {dimension_numbers = #tpu.dot_dimension_numbers<[1], [0], [0], [1], [0, 0, 1, 1], [], []>} : vector<2x32xf32>, vector<32x128xf32>, vector<2x128xf32> -> vector<2x128xf32>
    %253 = arith.addf %252, %11 : vector<2x128xf32>
    %254 = vector.extract_strided_slice %253 {offsets = [0, 0], sizes = [2, 32], strides = [1, 1]} : vector<2x128xf32> to vector<2x32xf32>
    %255 = vector.extract_strided_slice %224 {offsets = [0, 0], sizes = [2, 32], strides = [1, 1]} : vector<2x128xf32> to vector<2x32xf32>
    %256 = arith.addf %254, %255 : vector<2x32xf32>
    %257 = arith.negf %256 : vector<2x32xf32>
    %258 = math.exp %257 : vector<2x32xf32>
    %cst_46 = arith.constant 1.000000e+00 : f32
    %259 = vector.broadcast %cst_46 : f32 to vector<2x32xf32>
    %260 = arith.addf %259, %258 : vector<2x32xf32>
    %261 = arith.divf %259, %260 : vector<2x32xf32>
    %262 = vector.extract_strided_slice %253 {offsets = [0, 32], sizes = [2, 32], strides = [1, 1]} : vector<2x128xf32> to vector<2x32xf32>
    %263 = vector.extract_strided_slice %224 {offsets = [0, 32], sizes = [2, 32], strides = [1, 1]} : vector<2x128xf32> to vector<2x32xf32>
    %264 = arith.addf %262, %263 : vector<2x32xf32>
    %265 = arith.negf %264 : vector<2x32xf32>
    %266 = math.exp %265 : vector<2x32xf32>
    %cst_47 = arith.constant 1.000000e+00 : f32
    %267 = vector.broadcast %cst_47 : f32 to vector<2x32xf32>
    %268 = arith.addf %267, %266 : vector<2x32xf32>
    %269 = arith.divf %267, %268 : vector<2x32xf32>
    %270 = vector.extract_strided_slice %253 {offsets = [0, 64], sizes = [2, 32], strides = [1, 1]} : vector<2x128xf32> to vector<2x32xf32>
    %271 = vector.extract_strided_slice %224 {offsets = [0, 64], sizes = [2, 32], strides = [1, 1]} : vector<2x128xf32> to vector<2x32xf32>
    %272 = arith.mulf %261, %271 : vector<2x32xf32>
    %273 = arith.addf %270, %272 : vector<2x32xf32>
    %274 = math.tanh %273 : vector<2x32xf32>
    %cst_48 = arith.constant 1.000000e+00 : f32
    %275 = vector.broadcast %cst_48 : f32 to vector<2x32xf32>
    %276 = arith.subf %275, %269 : vector<2x32xf32>
    %277 = arith.mulf %276, %274 : vector<2x32xf32>
    %278 = arith.mulf %269, %215 : vector<2x32xf32>
    %279 = arith.addf %277, %278 : vector<2x32xf32>
    %c3_i32 = arith.constant 3 : i32
    %280 = vector.broadcast %c3_i32 : i32 to vector<2x32xi32>
    %281 = arith.cmpi eq, %19, %280 : vector<2x32xi32>
    %282 = arith.select %281, %279, %218 : vector<2x32xi1>, vector<2x32xf32>
    %283 = tpu.concatenate %251, %279 in 1 : vector<2x32xf32>, vector<2x32xf32> -> vector<2x64xf32>
    %cst_49 = arith.constant dense<0.000000e+00> : vector<2x256xf32>
    %284 = tpu.matmul %283, %5, %cst_49 {dimension_numbers = #tpu.dot_dimension_numbers<[1], [0], [0], [1], [0, 0, 1, 1], [], []>} : vector<2x64xf32>, vector<64x256xf32>, vector<2x256xf32> -> vector<2x256xf32>
    %285 = vector.extract_strided_slice %284 {offsets = [0, 0], sizes = [2, 128], strides = [1, 1]} : vector<2x256xf32> to vector<2x128xf32>
    %286 = arith.addf %285, %8 : vector<2x128xf32>
    %287 = vector.extract_strided_slice %284 {offsets = [0, 128], sizes = [2, 128], strides = [1, 1]} : vector<2x256xf32> to vector<2x128xf32>
    %288 = arith.addf %287, %14 : vector<2x128xf32>
    %289 = vector.extract_strided_slice %23 {offsets = [8, 0], sizes = [2, 128], strides = [1, 1]} : vector<16x128xf32> to vector<2x128xf32>
    %290 = vector.extract_strided_slice %289 {offsets = [0, 0], sizes = [2, 32], strides = [1, 1]} : vector<2x128xf32> to vector<2x32xf32>
    %291 = vector.extract_strided_slice %286 {offsets = [0, 0], sizes = [2, 32], strides = [1, 1]} : vector<2x128xf32> to vector<2x32xf32>
    %292 = arith.addf %290, %291 : vector<2x32xf32>
    %293 = arith.negf %292 : vector<2x32xf32>
    %294 = math.exp %293 : vector<2x32xf32>
    %cst_50 = arith.constant 1.000000e+00 : f32
    %295 = vector.broadcast %cst_50 : f32 to vector<2x32xf32>
    %296 = arith.addf %295, %294 : vector<2x32xf32>
    %297 = arith.divf %295, %296 : vector<2x32xf32>
    %298 = vector.extract_strided_slice %289 {offsets = [0, 32], sizes = [2, 32], strides = [1, 1]} : vector<2x128xf32> to vector<2x32xf32>
    %299 = vector.extract_strided_slice %286 {offsets = [0, 32], sizes = [2, 32], strides = [1, 1]} : vector<2x128xf32> to vector<2x32xf32>
    %300 = arith.addf %298, %299 : vector<2x32xf32>
    %301 = arith.negf %300 : vector<2x32xf32>
    %302 = math.exp %301 : vector<2x32xf32>
    %cst_51 = arith.constant 1.000000e+00 : f32
    %303 = vector.broadcast %cst_51 : f32 to vector<2x32xf32>
    %304 = arith.addf %303, %302 : vector<2x32xf32>
    %305 = arith.divf %303, %304 : vector<2x32xf32>
    %306 = vector.extract_strided_slice %289 {offsets = [0, 64], sizes = [2, 32], strides = [1, 1]} : vector<2x128xf32> to vector<2x32xf32>
    %307 = vector.extract_strided_slice %286 {offsets = [0, 64], sizes = [2, 32], strides = [1, 1]} : vector<2x128xf32> to vector<2x32xf32>
    %308 = arith.mulf %297, %307 : vector<2x32xf32>
    %309 = arith.addf %306, %308 : vector<2x32xf32>
    %310 = math.tanh %309 : vector<2x32xf32>
    %cst_52 = arith.constant 1.000000e+00 : f32
    %311 = vector.broadcast %cst_52 : f32 to vector<2x32xf32>
    %312 = arith.subf %311, %305 : vector<2x32xf32>
    %313 = arith.mulf %312, %310 : vector<2x32xf32>
    %314 = arith.mulf %305, %251 : vector<2x32xf32>
    %315 = arith.addf %313, %314 : vector<2x32xf32>
    %cst_53 = arith.constant dense<0.000000e+00> : vector<2x128xf32>
    %316 = tpu.matmul %315, %1, %cst_53 {dimension_numbers = #tpu.dot_dimension_numbers<[1], [0], [0], [1], [0, 0, 1, 1], [], []>} : vector<2x32xf32>, vector<32x128xf32>, vector<2x128xf32> -> vector<2x128xf32>
    %317 = arith.addf %316, %11 : vector<2x128xf32>
    %318 = vector.extract_strided_slice %317 {offsets = [0, 0], sizes = [2, 32], strides = [1, 1]} : vector<2x128xf32> to vector<2x32xf32>
    %319 = vector.extract_strided_slice %288 {offsets = [0, 0], sizes = [2, 32], strides = [1, 1]} : vector<2x128xf32> to vector<2x32xf32>
    %320 = arith.addf %318, %319 : vector<2x32xf32>
    %321 = arith.negf %320 : vector<2x32xf32>
    %322 = math.exp %321 : vector<2x32xf32>
    %cst_54 = arith.constant 1.000000e+00 : f32
    %323 = vector.broadcast %cst_54 : f32 to vector<2x32xf32>
    %324 = arith.addf %323, %322 : vector<2x32xf32>
    %325 = arith.divf %323, %324 : vector<2x32xf32>
    %326 = vector.extract_strided_slice %317 {offsets = [0, 32], sizes = [2, 32], strides = [1, 1]} : vector<2x128xf32> to vector<2x32xf32>
    %327 = vector.extract_strided_slice %288 {offsets = [0, 32], sizes = [2, 32], strides = [1, 1]} : vector<2x128xf32> to vector<2x32xf32>
    %328 = arith.addf %326, %327 : vector<2x32xf32>
    %329 = arith.negf %328 : vector<2x32xf32>
    %330 = math.exp %329 : vector<2x32xf32>
    %cst_55 = arith.constant 1.000000e+00 : f32
    %331 = vector.broadcast %cst_55 : f32 to vector<2x32xf32>
    %332 = arith.addf %331, %330 : vector<2x32xf32>
    %333 = arith.divf %331, %332 : vector<2x32xf32>
    %334 = vector.extract_strided_slice %317 {offsets = [0, 64], sizes = [2, 32], strides = [1, 1]} : vector<2x128xf32> to vector<2x32xf32>
    %335 = vector.extract_strided_slice %288 {offsets = [0, 64], sizes = [2, 32], strides = [1, 1]} : vector<2x128xf32> to vector<2x32xf32>
    %336 = arith.mulf %325, %335 : vector<2x32xf32>
    %337 = arith.addf %334, %336 : vector<2x32xf32>
    %338 = math.tanh %337 : vector<2x32xf32>
    %cst_56 = arith.constant 1.000000e+00 : f32
    %339 = vector.broadcast %cst_56 : f32 to vector<2x32xf32>
    %340 = arith.subf %339, %333 : vector<2x32xf32>
    %341 = arith.mulf %340, %338 : vector<2x32xf32>
    %342 = arith.mulf %333, %279 : vector<2x32xf32>
    %343 = arith.addf %341, %342 : vector<2x32xf32>
    %c4_i32 = arith.constant 4 : i32
    %344 = vector.broadcast %c4_i32 : i32 to vector<2x32xi32>
    %345 = arith.cmpi eq, %19, %344 : vector<2x32xi32>
    %346 = arith.select %345, %343, %282 : vector<2x32xi1>, vector<2x32xf32>
    %347 = tpu.concatenate %315, %343 in 1 : vector<2x32xf32>, vector<2x32xf32> -> vector<2x64xf32>
    %cst_57 = arith.constant dense<0.000000e+00> : vector<2x256xf32>
    %348 = tpu.matmul %347, %5, %cst_57 {dimension_numbers = #tpu.dot_dimension_numbers<[1], [0], [0], [1], [0, 0, 1, 1], [], []>} : vector<2x64xf32>, vector<64x256xf32>, vector<2x256xf32> -> vector<2x256xf32>
    %349 = vector.extract_strided_slice %348 {offsets = [0, 0], sizes = [2, 128], strides = [1, 1]} : vector<2x256xf32> to vector<2x128xf32>
    %350 = arith.addf %349, %8 : vector<2x128xf32>
    %351 = vector.extract_strided_slice %348 {offsets = [0, 128], sizes = [2, 128], strides = [1, 1]} : vector<2x256xf32> to vector<2x128xf32>
    %352 = arith.addf %351, %14 : vector<2x128xf32>
    %353 = vector.extract_strided_slice %23 {offsets = [10, 0], sizes = [2, 128], strides = [1, 1]} : vector<16x128xf32> to vector<2x128xf32>
    %354 = vector.extract_strided_slice %353 {offsets = [0, 0], sizes = [2, 32], strides = [1, 1]} : vector<2x128xf32> to vector<2x32xf32>
    %355 = vector.extract_strided_slice %350 {offsets = [0, 0], sizes = [2, 32], strides = [1, 1]} : vector<2x128xf32> to vector<2x32xf32>
    %356 = arith.addf %354, %355 : vector<2x32xf32>
    %357 = arith.negf %356 : vector<2x32xf32>
    %358 = math.exp %357 : vector<2x32xf32>
    %cst_58 = arith.constant 1.000000e+00 : f32
    %359 = vector.broadcast %cst_58 : f32 to vector<2x32xf32>
    %360 = arith.addf %359, %358 : vector<2x32xf32>
    %361 = arith.divf %359, %360 : vector<2x32xf32>
    %362 = vector.extract_strided_slice %353 {offsets = [0, 32], sizes = [2, 32], strides = [1, 1]} : vector<2x128xf32> to vector<2x32xf32>
    %363 = vector.extract_strided_slice %350 {offsets = [0, 32], sizes = [2, 32], strides = [1, 1]} : vector<2x128xf32> to vector<2x32xf32>
    %364 = arith.addf %362, %363 : vector<2x32xf32>
    %365 = arith.negf %364 : vector<2x32xf32>
    %366 = math.exp %365 : vector<2x32xf32>
    %cst_59 = arith.constant 1.000000e+00 : f32
    %367 = vector.broadcast %cst_59 : f32 to vector<2x32xf32>
    %368 = arith.addf %367, %366 : vector<2x32xf32>
    %369 = arith.divf %367, %368 : vector<2x32xf32>
    %370 = vector.extract_strided_slice %353 {offsets = [0, 64], sizes = [2, 32], strides = [1, 1]} : vector<2x128xf32> to vector<2x32xf32>
    %371 = vector.extract_strided_slice %350 {offsets = [0, 64], sizes = [2, 32], strides = [1, 1]} : vector<2x128xf32> to vector<2x32xf32>
    %372 = arith.mulf %361, %371 : vector<2x32xf32>
    %373 = arith.addf %370, %372 : vector<2x32xf32>
    %374 = math.tanh %373 : vector<2x32xf32>
    %cst_60 = arith.constant 1.000000e+00 : f32
    %375 = vector.broadcast %cst_60 : f32 to vector<2x32xf32>
    %376 = arith.subf %375, %369 : vector<2x32xf32>
    %377 = arith.mulf %376, %374 : vector<2x32xf32>
    %378 = arith.mulf %369, %315 : vector<2x32xf32>
    %379 = arith.addf %377, %378 : vector<2x32xf32>
    %cst_61 = arith.constant dense<0.000000e+00> : vector<2x128xf32>
    %380 = tpu.matmul %379, %1, %cst_61 {dimension_numbers = #tpu.dot_dimension_numbers<[1], [0], [0], [1], [0, 0, 1, 1], [], []>} : vector<2x32xf32>, vector<32x128xf32>, vector<2x128xf32> -> vector<2x128xf32>
    %381 = arith.addf %380, %11 : vector<2x128xf32>
    %382 = vector.extract_strided_slice %381 {offsets = [0, 0], sizes = [2, 32], strides = [1, 1]} : vector<2x128xf32> to vector<2x32xf32>
    %383 = vector.extract_strided_slice %352 {offsets = [0, 0], sizes = [2, 32], strides = [1, 1]} : vector<2x128xf32> to vector<2x32xf32>
    %384 = arith.addf %382, %383 : vector<2x32xf32>
    %385 = arith.negf %384 : vector<2x32xf32>
    %386 = math.exp %385 : vector<2x32xf32>
    %cst_62 = arith.constant 1.000000e+00 : f32
    %387 = vector.broadcast %cst_62 : f32 to vector<2x32xf32>
    %388 = arith.addf %387, %386 : vector<2x32xf32>
    %389 = arith.divf %387, %388 : vector<2x32xf32>
    %390 = vector.extract_strided_slice %381 {offsets = [0, 32], sizes = [2, 32], strides = [1, 1]} : vector<2x128xf32> to vector<2x32xf32>
    %391 = vector.extract_strided_slice %352 {offsets = [0, 32], sizes = [2, 32], strides = [1, 1]} : vector<2x128xf32> to vector<2x32xf32>
    %392 = arith.addf %390, %391 : vector<2x32xf32>
    %393 = arith.negf %392 : vector<2x32xf32>
    %394 = math.exp %393 : vector<2x32xf32>
    %cst_63 = arith.constant 1.000000e+00 : f32
    %395 = vector.broadcast %cst_63 : f32 to vector<2x32xf32>
    %396 = arith.addf %395, %394 : vector<2x32xf32>
    %397 = arith.divf %395, %396 : vector<2x32xf32>
    %398 = vector.extract_strided_slice %381 {offsets = [0, 64], sizes = [2, 32], strides = [1, 1]} : vector<2x128xf32> to vector<2x32xf32>
    %399 = vector.extract_strided_slice %352 {offsets = [0, 64], sizes = [2, 32], strides = [1, 1]} : vector<2x128xf32> to vector<2x32xf32>
    %400 = arith.mulf %389, %399 : vector<2x32xf32>
    %401 = arith.addf %398, %400 : vector<2x32xf32>
    %402 = math.tanh %401 : vector<2x32xf32>
    %cst_64 = arith.constant 1.000000e+00 : f32
    %403 = vector.broadcast %cst_64 : f32 to vector<2x32xf32>
    %404 = arith.subf %403, %397 : vector<2x32xf32>
    %405 = arith.mulf %404, %402 : vector<2x32xf32>
    %406 = arith.mulf %397, %343 : vector<2x32xf32>
    %407 = arith.addf %405, %406 : vector<2x32xf32>
    %c5_i32 = arith.constant 5 : i32
    %408 = vector.broadcast %c5_i32 : i32 to vector<2x32xi32>
    %409 = arith.cmpi eq, %19, %408 : vector<2x32xi32>
    %410 = arith.select %409, %407, %346 : vector<2x32xi1>, vector<2x32xf32>
    %411 = tpu.concatenate %379, %407 in 1 : vector<2x32xf32>, vector<2x32xf32> -> vector<2x64xf32>
    %cst_65 = arith.constant dense<0.000000e+00> : vector<2x256xf32>
    %412 = tpu.matmul %411, %5, %cst_65 {dimension_numbers = #tpu.dot_dimension_numbers<[1], [0], [0], [1], [0, 0, 1, 1], [], []>} : vector<2x64xf32>, vector<64x256xf32>, vector<2x256xf32> -> vector<2x256xf32>
    %413 = vector.extract_strided_slice %412 {offsets = [0, 0], sizes = [2, 128], strides = [1, 1]} : vector<2x256xf32> to vector<2x128xf32>
    %414 = arith.addf %413, %8 : vector<2x128xf32>
    %415 = vector.extract_strided_slice %412 {offsets = [0, 128], sizes = [2, 128], strides = [1, 1]} : vector<2x256xf32> to vector<2x128xf32>
    %416 = arith.addf %415, %14 : vector<2x128xf32>
    %417 = vector.extract_strided_slice %23 {offsets = [12, 0], sizes = [2, 128], strides = [1, 1]} : vector<16x128xf32> to vector<2x128xf32>
    %418 = vector.extract_strided_slice %417 {offsets = [0, 0], sizes = [2, 32], strides = [1, 1]} : vector<2x128xf32> to vector<2x32xf32>
    %419 = vector.extract_strided_slice %414 {offsets = [0, 0], sizes = [2, 32], strides = [1, 1]} : vector<2x128xf32> to vector<2x32xf32>
    %420 = arith.addf %418, %419 : vector<2x32xf32>
    %421 = arith.negf %420 : vector<2x32xf32>
    %422 = math.exp %421 : vector<2x32xf32>
    %cst_66 = arith.constant 1.000000e+00 : f32
    %423 = vector.broadcast %cst_66 : f32 to vector<2x32xf32>
    %424 = arith.addf %423, %422 : vector<2x32xf32>
    %425 = arith.divf %423, %424 : vector<2x32xf32>
    %426 = vector.extract_strided_slice %417 {offsets = [0, 32], sizes = [2, 32], strides = [1, 1]} : vector<2x128xf32> to vector<2x32xf32>
    %427 = vector.extract_strided_slice %414 {offsets = [0, 32], sizes = [2, 32], strides = [1, 1]} : vector<2x128xf32> to vector<2x32xf32>
    %428 = arith.addf %426, %427 : vector<2x32xf32>
    %429 = arith.negf %428 : vector<2x32xf32>
    %430 = math.exp %429 : vector<2x32xf32>
    %cst_67 = arith.constant 1.000000e+00 : f32
    %431 = vector.broadcast %cst_67 : f32 to vector<2x32xf32>
    %432 = arith.addf %431, %430 : vector<2x32xf32>
    %433 = arith.divf %431, %432 : vector<2x32xf32>
    %434 = vector.extract_strided_slice %417 {offsets = [0, 64], sizes = [2, 32], strides = [1, 1]} : vector<2x128xf32> to vector<2x32xf32>
    %435 = vector.extract_strided_slice %414 {offsets = [0, 64], sizes = [2, 32], strides = [1, 1]} : vector<2x128xf32> to vector<2x32xf32>
    %436 = arith.mulf %425, %435 : vector<2x32xf32>
    %437 = arith.addf %434, %436 : vector<2x32xf32>
    %438 = math.tanh %437 : vector<2x32xf32>
    %cst_68 = arith.constant 1.000000e+00 : f32
    %439 = vector.broadcast %cst_68 : f32 to vector<2x32xf32>
    %440 = arith.subf %439, %433 : vector<2x32xf32>
    %441 = arith.mulf %440, %438 : vector<2x32xf32>
    %442 = arith.mulf %433, %379 : vector<2x32xf32>
    %443 = arith.addf %441, %442 : vector<2x32xf32>
    %cst_69 = arith.constant dense<0.000000e+00> : vector<2x128xf32>
    %444 = tpu.matmul %443, %1, %cst_69 {dimension_numbers = #tpu.dot_dimension_numbers<[1], [0], [0], [1], [0, 0, 1, 1], [], []>} : vector<2x32xf32>, vector<32x128xf32>, vector<2x128xf32> -> vector<2x128xf32>
    %445 = arith.addf %444, %11 : vector<2x128xf32>
    %446 = vector.extract_strided_slice %445 {offsets = [0, 0], sizes = [2, 32], strides = [1, 1]} : vector<2x128xf32> to vector<2x32xf32>
    %447 = vector.extract_strided_slice %416 {offsets = [0, 0], sizes = [2, 32], strides = [1, 1]} : vector<2x128xf32> to vector<2x32xf32>
    %448 = arith.addf %446, %447 : vector<2x32xf32>
    %449 = arith.negf %448 : vector<2x32xf32>
    %450 = math.exp %449 : vector<2x32xf32>
    %cst_70 = arith.constant 1.000000e+00 : f32
    %451 = vector.broadcast %cst_70 : f32 to vector<2x32xf32>
    %452 = arith.addf %451, %450 : vector<2x32xf32>
    %453 = arith.divf %451, %452 : vector<2x32xf32>
    %454 = vector.extract_strided_slice %445 {offsets = [0, 32], sizes = [2, 32], strides = [1, 1]} : vector<2x128xf32> to vector<2x32xf32>
    %455 = vector.extract_strided_slice %416 {offsets = [0, 32], sizes = [2, 32], strides = [1, 1]} : vector<2x128xf32> to vector<2x32xf32>
    %456 = arith.addf %454, %455 : vector<2x32xf32>
    %457 = arith.negf %456 : vector<2x32xf32>
    %458 = math.exp %457 : vector<2x32xf32>
    %cst_71 = arith.constant 1.000000e+00 : f32
    %459 = vector.broadcast %cst_71 : f32 to vector<2x32xf32>
    %460 = arith.addf %459, %458 : vector<2x32xf32>
    %461 = arith.divf %459, %460 : vector<2x32xf32>
    %462 = vector.extract_strided_slice %445 {offsets = [0, 64], sizes = [2, 32], strides = [1, 1]} : vector<2x128xf32> to vector<2x32xf32>
    %463 = vector.extract_strided_slice %416 {offsets = [0, 64], sizes = [2, 32], strides = [1, 1]} : vector<2x128xf32> to vector<2x32xf32>
    %464 = arith.mulf %453, %463 : vector<2x32xf32>
    %465 = arith.addf %462, %464 : vector<2x32xf32>
    %466 = math.tanh %465 : vector<2x32xf32>
    %cst_72 = arith.constant 1.000000e+00 : f32
    %467 = vector.broadcast %cst_72 : f32 to vector<2x32xf32>
    %468 = arith.subf %467, %461 : vector<2x32xf32>
    %469 = arith.mulf %468, %466 : vector<2x32xf32>
    %470 = arith.mulf %461, %407 : vector<2x32xf32>
    %471 = arith.addf %469, %470 : vector<2x32xf32>
    %c6_i32 = arith.constant 6 : i32
    %472 = vector.broadcast %c6_i32 : i32 to vector<2x32xi32>
    %473 = arith.cmpi eq, %19, %472 : vector<2x32xi32>
    %474 = arith.select %473, %471, %410 : vector<2x32xi1>, vector<2x32xf32>
    %475 = tpu.concatenate %443, %471 in 1 : vector<2x32xf32>, vector<2x32xf32> -> vector<2x64xf32>
    %cst_73 = arith.constant dense<0.000000e+00> : vector<2x256xf32>
    %476 = tpu.matmul %475, %5, %cst_73 {dimension_numbers = #tpu.dot_dimension_numbers<[1], [0], [0], [1], [0, 0, 1, 1], [], []>} : vector<2x64xf32>, vector<64x256xf32>, vector<2x256xf32> -> vector<2x256xf32>
    %477 = vector.extract_strided_slice %476 {offsets = [0, 0], sizes = [2, 128], strides = [1, 1]} : vector<2x256xf32> to vector<2x128xf32>
    %478 = arith.addf %477, %8 : vector<2x128xf32>
    %479 = vector.extract_strided_slice %476 {offsets = [0, 128], sizes = [2, 128], strides = [1, 1]} : vector<2x256xf32> to vector<2x128xf32>
    %480 = arith.addf %479, %14 : vector<2x128xf32>
    %481 = vector.extract_strided_slice %23 {offsets = [14, 0], sizes = [2, 128], strides = [1, 1]} : vector<16x128xf32> to vector<2x128xf32>
    %482 = vector.extract_strided_slice %481 {offsets = [0, 0], sizes = [2, 32], strides = [1, 1]} : vector<2x128xf32> to vector<2x32xf32>
    %483 = vector.extract_strided_slice %478 {offsets = [0, 0], sizes = [2, 32], strides = [1, 1]} : vector<2x128xf32> to vector<2x32xf32>
    %484 = arith.addf %482, %483 : vector<2x32xf32>
    %485 = arith.negf %484 : vector<2x32xf32>
    %486 = math.exp %485 : vector<2x32xf32>
    %cst_74 = arith.constant 1.000000e+00 : f32
    %487 = vector.broadcast %cst_74 : f32 to vector<2x32xf32>
    %488 = arith.addf %487, %486 : vector<2x32xf32>
    %489 = arith.divf %487, %488 : vector<2x32xf32>
    %490 = vector.extract_strided_slice %481 {offsets = [0, 32], sizes = [2, 32], strides = [1, 1]} : vector<2x128xf32> to vector<2x32xf32>
    %491 = vector.extract_strided_slice %478 {offsets = [0, 32], sizes = [2, 32], strides = [1, 1]} : vector<2x128xf32> to vector<2x32xf32>
    %492 = arith.addf %490, %491 : vector<2x32xf32>
    %493 = arith.negf %492 : vector<2x32xf32>
    %494 = math.exp %493 : vector<2x32xf32>
    %cst_75 = arith.constant 1.000000e+00 : f32
    %495 = vector.broadcast %cst_75 : f32 to vector<2x32xf32>
    %496 = arith.addf %495, %494 : vector<2x32xf32>
    %497 = arith.divf %495, %496 : vector<2x32xf32>
    %498 = vector.extract_strided_slice %481 {offsets = [0, 64], sizes = [2, 32], strides = [1, 1]} : vector<2x128xf32> to vector<2x32xf32>
    %499 = vector.extract_strided_slice %478 {offsets = [0, 64], sizes = [2, 32], strides = [1, 1]} : vector<2x128xf32> to vector<2x32xf32>
    %500 = arith.mulf %489, %499 : vector<2x32xf32>
    %501 = arith.addf %498, %500 : vector<2x32xf32>
    %502 = math.tanh %501 : vector<2x32xf32>
    %cst_76 = arith.constant 1.000000e+00 : f32
    %503 = vector.broadcast %cst_76 : f32 to vector<2x32xf32>
    %504 = arith.subf %503, %497 : vector<2x32xf32>
    %505 = arith.mulf %504, %502 : vector<2x32xf32>
    %506 = arith.mulf %497, %443 : vector<2x32xf32>
    %507 = arith.addf %505, %506 : vector<2x32xf32>
    %cst_77 = arith.constant dense<0.000000e+00> : vector<2x128xf32>
    %508 = tpu.matmul %507, %1, %cst_77 {dimension_numbers = #tpu.dot_dimension_numbers<[1], [0], [0], [1], [0, 0, 1, 1], [], []>} : vector<2x32xf32>, vector<32x128xf32>, vector<2x128xf32> -> vector<2x128xf32>
    %509 = arith.addf %508, %11 : vector<2x128xf32>
    %510 = vector.extract_strided_slice %509 {offsets = [0, 0], sizes = [2, 32], strides = [1, 1]} : vector<2x128xf32> to vector<2x32xf32>
    %511 = vector.extract_strided_slice %480 {offsets = [0, 0], sizes = [2, 32], strides = [1, 1]} : vector<2x128xf32> to vector<2x32xf32>
    %512 = arith.addf %510, %511 : vector<2x32xf32>
    %513 = arith.negf %512 : vector<2x32xf32>
    %514 = math.exp %513 : vector<2x32xf32>
    %cst_78 = arith.constant 1.000000e+00 : f32
    %515 = vector.broadcast %cst_78 : f32 to vector<2x32xf32>
    %516 = arith.addf %515, %514 : vector<2x32xf32>
    %517 = arith.divf %515, %516 : vector<2x32xf32>
    %518 = vector.extract_strided_slice %509 {offsets = [0, 32], sizes = [2, 32], strides = [1, 1]} : vector<2x128xf32> to vector<2x32xf32>
    %519 = vector.extract_strided_slice %480 {offsets = [0, 32], sizes = [2, 32], strides = [1, 1]} : vector<2x128xf32> to vector<2x32xf32>
    %520 = arith.addf %518, %519 : vector<2x32xf32>
    %521 = arith.negf %520 : vector<2x32xf32>
    %522 = math.exp %521 : vector<2x32xf32>
    %cst_79 = arith.constant 1.000000e+00 : f32
    %523 = vector.broadcast %cst_79 : f32 to vector<2x32xf32>
    %524 = arith.addf %523, %522 : vector<2x32xf32>
    %525 = arith.divf %523, %524 : vector<2x32xf32>
    %526 = vector.extract_strided_slice %509 {offsets = [0, 64], sizes = [2, 32], strides = [1, 1]} : vector<2x128xf32> to vector<2x32xf32>
    %527 = vector.extract_strided_slice %480 {offsets = [0, 64], sizes = [2, 32], strides = [1, 1]} : vector<2x128xf32> to vector<2x32xf32>
    %528 = arith.mulf %517, %527 : vector<2x32xf32>
    %529 = arith.addf %526, %528 : vector<2x32xf32>
    %530 = math.tanh %529 : vector<2x32xf32>
    %cst_80 = arith.constant 1.000000e+00 : f32
    %531 = vector.broadcast %cst_80 : f32 to vector<2x32xf32>
    %532 = arith.subf %531, %525 : vector<2x32xf32>
    %533 = arith.mulf %532, %530 : vector<2x32xf32>
    %534 = arith.mulf %525, %471 : vector<2x32xf32>
    %535 = arith.addf %533, %534 : vector<2x32xf32>
    %c7_i32 = arith.constant 7 : i32
    %536 = vector.broadcast %c7_i32 : i32 to vector<2x32xi32>
    %537 = arith.cmpi eq, %19, %536 : vector<2x32xi32>
    %538 = arith.select %537, %535, %474 : vector<2x32xi1>, vector<2x32xf32>
    %cst_81 = arith.constant dense<0.000000e+00> : vector<2x128xf32>
    %539 = tpu.matmul %538, %2, %cst_81 {dimension_numbers = #tpu.dot_dimension_numbers<[1], [0], [0], [1], [0, 0, 1, 1], [], []>} : vector<2x32xf32>, vector<32x128xf32>, vector<2x128xf32> -> vector<2x128xf32>
    %540 = vector.broadcast %4 : vector<1x128xf32> to vector<2x128xf32>
    %541 = arith.addf %539, %540 : vector<2x128xf32>
    %c0_82 = arith.constant 0 : index
    %c0_83 = arith.constant 0 : index
    %542 = vector.load %arg3[%c0_82, %c0_83] : memref<2x128xf32, #tpu.memory_space<vmem>>, vector<2x128xf32>
    tpu.vector_store %arg3[%c0_82, %c0_83], %541 {strides = array<i32>} : memref<2x128xf32, #tpu.memory_space<vmem>>, vector<2x128xf32>,
    return
  }
}

</mosaic_0001>

<bundles_post_ra>
// kernel: speech_pace_forward.1
= control target key start
LH: loop header
LB: loop body
LE: loop exit
PB: predicated region body
PF: predicated region fallthrough
CT: control target
= control target key end

     0   :  { %8 = vsyncpa [#allocation3], 0  ;;  %s2099_s0 = inlined_call_operand.vmem [shape: f32[16,16], index: 0, kind: input, shape index: {}]   ;;  %s2100_s1 = inlined_call_operand.vmem [shape: s32[2,1], index: 1, kind: input, shape index: {}]   ;;  %s2101_s2 = inlined_call_operand.hbm [shape: f32[184,256], index: 2, kind: input, shape index: {}]   ;;  %s2102_s3 = inlined_call_operand.hbm [shape: f32[2,128], index: 3, kind: output, shape index: {}]  }
   0x1   :  { %9 = vsyncpa [#allocation4], 0  ;;  %s18_s14 = sshll.u32 %s2101_s2, 4  ;;  %s1637_s15 = smov [#allocation2]   ;;  %s19_s14 = int_to_ptr.hbm [resolvable:$true] %s18_s14 }
   0x2   :  { %s20_s16 = sshll.u32 %s1637_s15, 4  ;;  %s1638_s17 = smov 256   ;;  %s21_s16 = int_to_ptr.vmem [resolvable:$true] %s20_s16 }
   0x3   :  { %s1639_s18 = smov 16  }
   0x4   :  { %26 = dma.hbm_to_vmem [thread:$0]  %s19_s14, 5888, %s21_s16, [#allocation3], %s1638_s17, %s1638_s17, %s1639_s18  }
   0x5   :  { %1633 = dma.done.wait [#allocation3], 5888  }
   0x6   :  { %1634 = vsyncadd [#allocation3], 4294961408  ;;  %v1668_v0 = vld [vmem:[#allocation2 + $0x160] sm:$0xff]  ;;  %v1670_v1 = vld [vmem:[#allocation2 + $0x150] sm:$0xff]  ;;  %vm69_vm0 = vcmask 130048   ;;  %v1640_v11 = vmov 0.0  }
   0x7   :  { %111 = vmatpush.msra.mxu1 %v1668_v0  ;;  %v1673_v2 = vld [vmem:[#allocation2 + $0x140] sm:$0xff]  ;;  %v32_v3 = vld [vmem:[#allocation2 + $0x10] sm:$0xff]  ;;  %s1641_s20 = smov 64   ;;  %s1642_s21 = smov 96   ;;  %v1721_v37 = vld [vmem:[#allocation2 + $0x168] sm:$0xff]  ;;  %vm187_vm5 = vcmask 261120  }
   0x8   :  { %v31_v4 = vld [vmem:[#allocation2] sm:$0xff]  ;;  %90 = vmatpush.msra.mxu0 %v32_v3  ;;  %v1679_v6 = vld [vmem:[#allocation2 + $0x130] sm:$0xff]  ;;  %v1723_v38 = vld [vmem:[#allocation2 + $0x158] sm:$0xff]  ;;  %131 = vmatpush.msra.mxu2 %v1721_v37  ;;  %vm99_vm10 = vcmask 523264   ;;  %s1409_s28 = sshll.u32 %s2102_s3, 4  ;;  %s1410_s28 = int_to_ptr.hbm [resolvable:$true] %s1409_s28 }
   0x9   :  { %112 = vmatpush.msra.mxu1 %v1670_v1  ;;  %v67_v5 = vld [vmem:[%s2099_s0] sm:$0xff]  ;;  %v1687_v8 = vld [vmem:[#allocation2 + $0x110] sm:$0xff]  ;;  %v1727_v39 = vld [vmem:[#allocation2 + $0x148] sm:$0xff] }
   0xa   :  { %91 = vmatpush.msra.mxu0 %v31_v4  ;;  %v1682_v7 = vld [vmem:[#allocation2 + $0x120] sm:$0xff]  ;;  %v1695_v10 = vld [vmem:[#allocation2 + $0xf0] sm:$0xff]  ;;  %132 = vmatpush.msra.mxu2 %v1723_v38  ;;  %v1735_v42 = vld [vmem:[#allocation2 + $0x138] sm:$0xff] }
   0xb   :  { %113 = vmatpush.msra.mxu1 %v1673_v2  ;;  %1420 = vmatmul.msk.f32.vlgmr.msra.gmra.mxu0 %vm69_vm0, %v67_v5  ;;  %v1691_v9 = vld [vmem:[#allocation2 + $0x100] sm:$0xff]  ;;  %v1705_v12 = vld [vmem:[#allocation2 + $0xb0] ss:$0 sm:$0xff]  ;;  %v1743_v44 = vld [vmem:[#allocation2 + $0x128] sm:$0xff] }
   0xc   :  { %264 = vmatpush.msrb.mxu0 %v1668_v0  ;;  %v1709_v15 = vld [vmem:[#allocation2 + $0xa0] ss:$0 sm:$0xff]  ;;  %v1729_v40 = vld [vmem:[#allocation2 + $0x50] sm:$0xff]  ;;  %133 = vmatpush.msra.mxu2 %v1727_v39  ;;  %v1751_v46 = vld [vmem:[#allocation2 + $0x118] sm:$0xff] }
   0xd   :  { %114 = vmatpush.msra.mxu1 %v1679_v6  ;;  %202 = vmatpush.msra.mxu3 %v1729_v40  ;;  %v1733_v41 = vld [vmem:[#allocation2 + $0x40] sm:$0xff]  ;;  %v1737_v43 = vld [vmem:[#allocation2 + $0x30] sm:$0xff]  ;;  %v1757_v47 = vld [vmem:[#allocation2 + $0x108] sm:$0xff] }
   0xe   :  { %265 = vmatpush.msrb.mxu0 %v1670_v1  ;;  %v1745_v45 = vld [vmem:[#allocation2 + $0x20] sm:$0xff]  ;;  %134 = vmatpush.msra.mxu2 %v1735_v42  ;;  %v1763_v48 = vld [vmem:[#allocation2 + $0xf8] sm:$0xff]  ;;  %v1800_v54 = vld [vmem:[#allocation2 + $0xd0] ss:$0 sm:$0xff] }
   0xf   :  { %115 = vmatpush.msra.mxu1 %v1682_v7  ;;  %203 = vmatpush.msra.mxu3 %v1733_v41  ;;  %v1813_v58 = vld [vmem:[#allocation2 + $0xc0] ss:$0 sm:$0xff] }
  0x10   :  { %266 = vmatpush.msrb.mxu0 %v1673_v2  ;;  %135 = vmatpush.msra.mxu2 %v1743_v44 }
  0x11   :  { %116 = vmatpush.msra.mxu1 %v1687_v8  ;;  %204 = vmatpush.msra.mxu3 %v1737_v43 }
  0x12   :  { %267 = vmatpush.msrb.mxu0 %v1679_v6  ;;  %136 = vmatpush.msra.mxu2 %v1751_v46 }
  0x13   :  { %117 = vmatpush.msra.mxu1 %v1691_v9  ;;  %205 = vmatpush.msra.mxu3 %v1745_v45 }
  0x14   :  { %268 = vmatpush.msrb.mxu0 %v1682_v7  ;;  %137 = vmatpush.msra.mxu2 %v1757_v47 }
  0x15   :  { %118 = vmatpush.msra.mxu1 %v1695_v10  ;;  %284 = vmatpush.msrb.mxu3 %v1721_v37 }
  0x16   :  { %119 = vmatmul.f32.vlgmr.msra.gmra.mxu1 %v1640_v11  ;;  %269 = vmatpush.msrb.mxu0 %v1687_v8 }
  0x17   :  { %359 = vmatpush.msrb.mxu1 %v1729_v40  ;;  %285 = vmatpush.msrb.mxu3 %v1723_v38 }
  0x18   :  { %270 = vmatpush.msrb.mxu0 %v1691_v9  ;;  %138 = vmatpush.msra.mxu2 %v1763_v48 }
  0x19   :  { %360 = vmatpush.msrb.mxu1 %v1733_v41  ;;  %286 = vmatpush.msrb.mxu3 %v1727_v39 }
  0x1a   :  { %271 = vmatpush.msrb.mxu0 %v1695_v10  ;;  %139 = vmatmul.f32.vlgmr.msra.gmra.mxu2 %v1640_v11 }
  0x1b   :  { %361 = vmatpush.msrb.mxu1 %v1737_v43  ;;  %287 = vmatpush.msrb.mxu3 %v1735_v42 }
  0x1c   :  { %447 = vmatpush.msra.mxu0 %v1721_v37  ;;  %427 = vmatpush.msrb.mxu2 %v1668_v0 }
  0x1d   :  { %362 = vmatpush.msrb.mxu1 %v1745_v45  ;;  %288 = vmatpush.msrb.mxu3 %v1743_v44 }
  0x1e   :  { %448 = vmatpush.msra.mxu0 %v1723_v38  ;;  %428 = vmatpush.msrb.mxu2 %v1670_v1 }
  0x1f   :  { %522 = vmatpush.msra.mxu1 %v1729_v40  ;;  %289 = vmatpush.msrb.mxu3 %v1751_v46 }
  0x20   :  { %449 = vmatpush.msra.mxu0 %v1727_v39  ;;  %429 = vmatpush.msrb.mxu2 %v1673_v2 }
  0x21   :  { %523 = vmatpush.msra.mxu1 %v1733_v41  ;;  %290 = vmatpush.msrb.mxu3 %v1757_v47 }
  0x22   :  { %450 = vmatpush.msra.mxu0 %v1735_v42  ;;  %430 = vmatpush.msrb.mxu2 %v1679_v6 }
  0x23   :  { %524 = vmatpush.msra.mxu1 %v1737_v43  ;;  %291 = vmatpush.msrb.mxu3 %v1763_v48 }
  0x24   :  { %451 = vmatpush.msra.mxu0 %v1743_v44  ;;  %431 = vmatpush.msrb.mxu2 %v1682_v7 }
  0x25   :  { %525 = vmatpush.msra.mxu1 %v1745_v45 }
  0x26   :  { %452 = vmatpush.msra.mxu0 %v1751_v46  ;;  %432 = vmatpush.msrb.mxu2 %v1687_v8 }
  0x28   :  { %453 = vmatpush.msra.mxu0 %v1757_v47  ;;  %433 = vmatpush.msrb.mxu2 %v1691_v9 }
  0x2a   :  { %454 = vmatpush.msra.mxu0 %v1763_v48  ;;  %434 = vmatpush.msrb.mxu2 %v1695_v10 }
  0x2c   :  { %685 = vmatpush.msra.mxu2 %v1729_v40 }
  0x2e   :  { %686 = vmatpush.msra.mxu2 %v1733_v41 }
  0x30   :  { %687 = vmatpush.msra.mxu2 %v1737_v43 }
  0x32   :  { %688 = vmatpush.msra.mxu2 %v1745_v45 }
  0x88   :  { %v93_v16 = vpop.f32.mrf.mxu0 }
  0x89   :  { %v1712_v17 = vadd.f32 %v93_v16, %v1709_v15 }
  0x93   :  { %v120_v13 = vpop.f32.mrf.mxu1 }
  0x94   :  { %v143_v14 = vadd.f32 %v120_v13, %v1705_v12 }
  0x96   :  { %166 = vrot.lane.b32.xlu0 %v143_v14, %s1641_s20  ;;  %v145_v18 = vadd.f32 %v143_v14, %v1712_v17 }
  0x98   :  { %v1422_v19 = vmul.f32 -1.442695, %v145_v18 }
  0x9a   :  { %1470 = vpow2.f32 %v1422_v19 }
  0x9d   :  { %v140_v56 = vpop.f32.mrf.mxu2 }
  0x9e   :  { %v144_v57 = vadd.f32 %v140_v56, %v1800_v54 }
  0xa0   :  { %v1471_v20 = vpop.eup %1470  ;;  %231 = vrot.lane.b32.xlu2 %v144_v57, %s1641_s20 }
  0xa1   :  { %v149_v21 = vadd.f32 1.0, %v1471_v20 }
  0xa3   :  { %1472 = vrcp.f32 %v149_v21  ;;  %v161_v27 = vand.u32 2147483648, %v149_v21  ;;  %vm155_vm2 = vweird.f32 %v149_v21  ;;  %v159_v28 = vand.u32 2147483647, %v149_v21 }
  0xa5   :  { %v162_v30 = vor.u32 1.1754944e-38, %v161_v27  ;;  %vm160_vm4 = vcmp.eq.f32.partialorder %v159_v28, 8.507059e+37 }
  0xa9   :  { %v1473_v22 = vpop.eup %1472 }
  0xaa   :  { %v151_v23 = vmul.f32 %v1473_v22, %v149_v21  ;;  %vm156_vm1 = vweird.f32 %v1473_v22 }
  0xab   :  { %vm157_vm3 = vmor %vm155_vm2, %vm156_vm1 }
  0xac   :  { %v152_v24 = vsub.f32 1.0, %v151_v23 }
  0xae   :  { %v153_v25 = vmul.f32 %v1473_v22, %v152_v24  ;;  %v68_v24 = vld [vmem:[%s2099_s0 + $0x8] sm:$0xff] }
  0xaf   :  { %1421 = vmatmul.msk.f32.gmra.mxu0 %vm69_vm0, %v68_v24 }
  0xb0   :  { %v154_v26 = vadd.f32 %v1473_v22, %v153_v25 }
  0xb2   :  { %v158_v29 = vsel %vm157_vm3, %v1473_v22, %v154_v26 }
  0xb3   :  { %v1715_v32 = vsel %vm160_vm4, %v162_v30, %v158_v29 }
  0xb4   :  { %v176_v49 = vsub.f32 1.0, %v1715_v32  ;;  %v182_v51 = vmul.f32 0.0, %v1715_v32 }
  0xfa   :  { %v232_v19 = vpop.permute.xlu2 %231 }
 0x108   :  { %v167_v31 = vpop.permute.xlu0 %166 }
 0x109   :  { %v169_v33 = vmul.f32 %v167_v31, %v1715_v32 }
 0x10b   :  { %171 = vrot.lane.b32.xlu0 %v169_v33, %s1641_s20 }
 0x17d   :  { %v172_v34 = vpop.permute.xlu0 %171 }
 0x17e   :  { %v174_v35 = vadd.f32 %v172_v34, %v1712_v17  ;;  %v1840_v34 = vpop.f32.mrf.mxu0 }
 0x180   :  { %1474 = vtanh.f32 %v174_v35 }
 0x186   :  { %v1475_v36 = vpop.eup %1474 }
 0x187   :  { %178 = vrot.lane.b32.xlu1 %v1475_v36, %s1642_s21 }
 0x1f9   :  { %v179_v50 = vpop.permute.xlu1 %178 }
 0x1fa   :  { %v181_v52 = vmul.f32 %v179_v50, %v176_v49 }
 0x1fc   :  { %v1791_v53 = vadd.f32 %v182_v51, %v181_v52 }
 0x1fe   :  { %185 = vrot.lane.b32.xlu1 %v1791_v53, %s1642_s21 }
 0x270   :  { %v186_v55 = vpop.permute.xlu1 %185 }
 0x271   :  { %1423 = vmatmul.msk.f32.vlgmr.msra.gmra.mxu3 %vm187_vm5, %v186_v55 }
 0x272   :  { %590 = vmatpush.msra.mxu3 %v1668_v0 }
 0x274   :  { %591 = vmatpush.msra.mxu3 %v1670_v1 }
 0x276   :  { %592 = vmatpush.msra.mxu3 %v1673_v2 }
 0x278   :  { %593 = vmatpush.msra.mxu3 %v1679_v6 }
 0x27a   :  { %594 = vmatpush.msra.mxu3 %v1682_v7 }
 0x27c   :  { %595 = vmatpush.msra.mxu3 %v1687_v8 }
 0x27e   :  { %596 = vmatpush.msra.mxu3 %v1691_v9 }
 0x280   :  { %597 = vmatpush.msra.mxu3 %v1695_v10 }
 0x2f4   :  { %v207_v59 = vpop.f32.mrf.mxu3 }
 0x2f5   :  { %v208_v60 = vadd.f32 %v207_v59, %v1813_v58 }
 0x2f7   :  { %v210_v61 = vadd.f32 %v208_v60, %v144_v57 }
 0x2f9   :  { %v1424_v62 = vmul.f32 -1.442695, %v210_v61 }
 0x2fb   :  { %1476 = vpow2.f32 %v1424_v62 }
 0x301   :  { %v1477_v63 = vpop.eup %1476 }
 0x302   :  { %v214_v3 = vadd.f32 1.0, %v1477_v63 }
 0x304   :  { %1478 = vrcp.f32 %v214_v3  ;;  %v226_v13 = vand.u32 2147483648, %v214_v3  ;;  %v224_v16 = vand.u32 2147483647, %v214_v3  ;;  %vm220_vm7 = vweird.f32 %v214_v3 }
 0x306   :  { %v227_v20 = vor.u32 1.1754944e-38, %v226_v13  ;;  %vm225_vm9 = vcmp.eq.f32.partialorder %v224_v16, 8.507059e+37 }
 0x30a   :  { %v1479_v4 = vpop.eup %1478 }
 0x30b   :  { %v216_v5 = vmul.f32 %v1479_v4, %v214_v3  ;;  %vm221_vm6 = vweird.f32 %v1479_v4 }
 0x30c   :  { %vm222_vm8 = vmor %vm220_vm7, %vm221_vm6 }
 0x30d   :  { %v217_v11 = vsub.f32 1.0, %v216_v5 }
 0x30f   :  { %v218_v14 = vmul.f32 %v1479_v4, %v217_v11 }
 0x311   :  { %v219_v18 = vadd.f32 %v1479_v4, %v218_v14 }
 0x313   :  { %v223_v21 = vsel %vm222_vm8, %v1479_v4, %v219_v18 }
 0x314   :  { %v228_v22 = vsel %vm225_vm9, %v227_v20, %v223_v21  ;;  %v337_v21 = vrot.slane %v1791_v53, 6 }
 0x315   :  { %v234_v23 = vmul.f32 %v232_v19, %v228_v22  ;;  %v241_v28 = vsub.f32 1.0, %v228_v22  ;;  %v247_v30 = vmul.f32 0.0, %v228_v22 }
 0x317   :  { %236 = vrot.lane.b32.xlu2 %v234_v23, %s1641_s20 }
 0x371   :  { %v237_v25 = vpop.permute.xlu2 %236 }
 0x372   :  { %v239_v26 = vadd.f32 %v237_v25, %v208_v60 }
 0x374   :  { %1480 = vtanh.f32 %v239_v26 }
 0x37a   :  { %v1481_v27 = vpop.eup %1480 }
 0x37b   :  { %243 = vrot.lane.b32.xlu0 %v1481_v27, %s1642_s21 }
 0x3ed   :  { %v244_v29 = vpop.permute.xlu0 %243 }
 0x3ee   :  { %v246_v31 = vmul.f32 %v244_v29, %v241_v28 }
 0x3f0   :  { %v1822_v32 = vadd.f32 %v247_v30, %v246_v31 }
 0x3f2   :  { %v252_v33 = vsel %vm187_vm5, %v186_v55, %v1822_v32 }
 0x3f3   :  { %1425 = vmatmul.msk.f32.vlgmr.msrb.gmra.mxu0 %vm99_vm10, %v252_v33  ;;  %1426 = vmatmul.msk.f32.vlgmr.msrb.gmra.mxu3 %vm99_vm10, %v252_v33 }
 0x3f4   :  { %753 = vmatpush.msrb.mxu0 %v1668_v0  ;;  %844 = vmatpush.msrb.mxu3 %v1729_v40 }
 0x3f6   :  { %754 = vmatpush.msrb.mxu0 %v1670_v1  ;;  %845 = vmatpush.msrb.mxu3 %v1733_v41 }
 0x3f8   :  { %755 = vmatpush.msrb.mxu0 %v1673_v2  ;;  %846 = vmatpush.msrb.mxu3 %v1737_v43 }
 0x3fa   :  { %756 = vmatpush.msrb.mxu0 %v1679_v6  ;;  %847 = vmatpush.msrb.mxu3 %v1745_v45 }
 0x3fc   :  { %757 = vmatpush.msrb.mxu0 %v1682_v7 }
 0x3fe   :  { %758 = vmatpush.msrb.mxu0 %v1687_v8 }
 0x400   :  { %759 = vmatpush.msrb.mxu0 %v1691_v9 }
 0x402   :  { %760 = vmatpush.msrb.mxu0 %v1695_v10 }
 0x470   :  { %v273_v35 = vpop.f32.mrf.mxu0 }
 0x471   :  { %v296_v36 = vadd.f32 %v273_v35, %v1705_v12 }
 0x473   :  { %v299_v49 = vrot.slane %v296_v36, 6 }
 0x475   :  { %321 = vrot.lane.b32.xlu1 %v299_v49, %s1641_s20  ;;  %v301_v50 = vadd.f32 %v299_v49, %v1712_v17 }
 0x476   :  { %v293_v14 = vpop.f32.mrf.mxu3 }
 0x477   :  { %v1427_v51 = vmul.f32 -1.442695, %v301_v50  ;;  %v297_v16 = vadd.f32 %v293_v14, %v1800_v54 }
 0x479   :  { %1482 = vpow2.f32 %v1427_v51 }
 0x47f   :  { %v1483_v52 = vpop.eup %1482 }
 0x480   :  { %v305_v55 = vadd.f32 1.0, %v1483_v52 }
 0x482   :  { %1484 = vrcp.f32 %v305_v55  ;;  %v317_v62 = vand.u32 2147483648, %v305_v55  ;;  %vm311_vm12 = vweird.f32 %v305_v55  ;;  %v315_v63 = vand.u32 2147483647, %v305_v55 }
 0x484   :  { %v318_v4 = vor.u32 1.1754944e-38, %v317_v62  ;;  %vm316_vm14 = vcmp.eq.f32.partialorder %v315_v63, 8.507059e+37 }
 0x488   :  { %v1485_v56 = vpop.eup %1484 }
 0x489   :  { %v307_v57 = vmul.f32 %v1485_v56, %v305_v55  ;;  %vm312_vm11 = vweird.f32 %v1485_v56 }
 0x48a   :  { %vm313_vm13 = vmor %vm311_vm12, %vm312_vm11 }
 0x48b   :  { %v308_v59 = vsub.f32 1.0, %v307_v57 }
 0x48d   :  { %v309_v60 = vmul.f32 %v1485_v56, %v308_v59 }
 0x48f   :  { %v310_v61 = vadd.f32 %v1485_v56, %v309_v60 }
 0x491   :  { %v314_v3 = vsel %vm313_vm13, %v1485_v56, %v310_v61 }
 0x492   :  { %v319_v11 = vsel %vm316_vm14, %v318_v4, %v314_v3 }
 0x493   :  { %v331_v22 = vsub.f32 1.0, %v319_v11  ;;  %v339_v25 = vmul.f32 %v337_v21, %v319_v11 }
 0x4e7   :  { %v322_v5 = vpop.permute.xlu1 %321 }
 0x4e8   :  { %v324_v13 = vmul.f32 %v322_v5, %v319_v11 }
 0x4ea   :  { %326 = vrot.lane.b32.xlu2 %v324_v13, %s1641_s20 }
 0x4f2   :  { %388 = vrot.lane.b32.xlu2 %v297_v16, %s1641_s20 }
 0x544   :  { %v327_v18 = vpop.permute.xlu2 %326 }
 0x545   :  { %v329_v19 = vadd.f32 %v327_v18, %v1712_v17 }
 0x547   :  { %1486 = vtanh.f32 %v329_v19 }
 0x54c   :  { %v389_v60 = vpop.permute.xlu2 %388 }
 0x54d   :  { %v1487_v20 = vpop.eup %1486 }
 0x54e   :  { %333 = vrot.lane.b32.xlu0 %v1487_v20, %s1642_s21 }
 0x5c0   :  { %v334_v23 = vpop.permute.xlu0 %333 }
 0x5c1   :  { %v336_v24 = vmul.f32 %v334_v23, %v331_v22 }
 0x5c3   :  { %v1851_v26 = vadd.f32 %v339_v25, %v336_v24 }
 0x5c5   :  { %408 = vrot.lane.b32.xlu2 %v1851_v26, %s1642_s21  ;;  %v342_v27 = vrot.slane %v1851_v26, 2 }
 0x5c7   :  { %343 = vrot.lane.b32.xlu1 %v342_v27, %s1642_s21 }
 0x61f   :  { %v409_v19 = vpop.permute.xlu2 %408 }
 0x639   :  { %v344_v28 = vpop.permute.xlu1 %343 }
 0x63a   :  { %1428 = vmatmul.msk.f32.vlgmr.msrb.gmra.mxu1 %vm187_vm5, %v344_v28 }
 0x63b   :  { %610 = vmatpush.msrb.mxu1 %v1721_v37 }
 0x63d   :  { %611 = vmatpush.msrb.mxu1 %v1723_v38 }
 0x63f   :  { %612 = vmatpush.msrb.mxu1 %v1727_v39 }
 0x641   :  { %613 = vmatpush.msrb.mxu1 %v1735_v42 }
 0x643   :  { %614 = vmatpush.msrb.mxu1 %v1743_v44 }
 0x645   :  { %615 = vmatpush.msrb.mxu1 %v1751_v46 }
 0x647   :  { %616 = vmatpush.msrb.mxu1 %v1757_v47 }
 0x649   :  { %617 = vmatpush.msrb.mxu1 %v1763_v48 }
 0x6b7   :  { %v364_v53 = vpop.f32.mrf.mxu1 }
 0x6b8   :  { %v365_v29 = vadd.f32 %v364_v53, %v1813_v58 }
 0x6ba   :  { %v367_v30 = vadd.f32 %v365_v29, %v297_v16 }
 0x6bc   :  { %v1429_v31 = vmul.f32 -1.442695, %v367_v30 }
 0x6be   :  { %1488 = vpow2.f32 %v1429_v31 }
 0x6c4   :  { %v1489_v33 = vpop.eup %1488 }
 0x6c5   :  { %v371_v35 = vadd.f32 1.0, %v1489_v33 }
 0x6c7   :  { %1490 = vrcp.f32 %v371_v35  ;;  %v383_v51 = vand.u32 2147483648, %v371_v35  ;;  %v381_v55 = vand.u32 2147483647, %v371_v35  ;;  %vm377_vm0 = vweird.f32 %v371_v35 }
 0x6c9   :  { %v384_v57 = vor.u32 1.1754944e-38, %v383_v51  ;;  %vm382_vm2 = vcmp.eq.f32.partialorder %v381_v55, 8.507059e+37 }
 0x6cd   :  { %v1491_v36 = vpop.eup %1490 }
 0x6ce   :  { %v373_v49 = vmul.f32 %v1491_v36, %v371_v35  ;;  %vm378_vm15 = vweird.f32 %v1491_v36 }
 0x6cf   :  { %vm379_vm1 = vmor %vm377_vm0, %vm378_vm15 }
 0x6d0   :  { %v374_v50 = vsub.f32 1.0, %v373_v49 }
 0x6d2   :  { %v375_v52 = vmul.f32 %v1491_v36, %v374_v50 }
 0x6d4   :  { %v376_v56 = vadd.f32 %v1491_v36, %v375_v52 }
 0x6d6   :  { %v380_v59 = vsel %vm379_vm1, %v1491_v36, %v376_v56 }
 0x6d7   :  { %v385_v61 = vsel %vm382_vm2, %v384_v57, %v380_v59 }
 0x6d8   :  { %v391_v62 = vmul.f32 %v389_v60, %v385_v61  ;;  %v398_v5 = vsub.f32 1.0, %v385_v61  ;;  %v404_v13 = vmul.f32 %v385_v61, %v1822_v32 }
 0x6da   :  { %393 = vrot.lane.b32.xlu0 %v391_v62, %s1641_s20 }
 0x74c   :  { %v394_v63 = vpop.permute.xlu0 %393 }
 0x74d   :  { %v396_v3 = vadd.f32 %v394_v63, %v365_v29 }
 0x74f   :  { %1492 = vtanh.f32 %v396_v3  ;;  %v500_v3 = vrot.slane %v1851_v26, 6 }
 0x755   :  { %v1493_v4 = vpop.eup %1492 }
 0x756   :  { %400 = vrot.lane.b32.xlu1 %v1493_v4, %s1642_s21 }
 0x7c8   :  { %v401_v11 = vpop.permute.xlu1 %400 }
 0x7c9   :  { %v403_v14 = vmul.f32 %v401_v11, %v398_v5 }
 0x7cb   :  { %v1870_v16 = vadd.f32 %v404_v13, %v403_v14 }
 0x7cd   :  { %v412_v18 = vrot.slane %v1870_v16, 6 }
 0x7cf   :  { %v414_v20 = vsel %vm187_vm5, %v409_v19, %v412_v18 }
 0x7d0   :  { %v416_v21 = vrot.slane %v414_v20, 2 }
 0x7d2   :  { %1430 = vmatmul.msk.f32.vlgmr.msrb.gmra.mxu2 %vm99_vm10, %v416_v21  ;;  %1431 = vmatmul.msk.f32.vlgmr.msra.gmra.mxu0 %vm99_vm10, %v416_v21 }
 0x7d3   :  { %773 = vmatpush.msrb.mxu2 %v1721_v37  ;;  %1001 = vmatpush.msra.mxu0 %v1729_v40 }
 0x7d5   :  { %774 = vmatpush.msrb.mxu2 %v1723_v38  ;;  %1002 = vmatpush.msra.mxu0 %v1733_v41 }
 0x7d7   :  { %775 = vmatpush.msrb.mxu2 %v1727_v39  ;;  %1003 = vmatpush.msra.mxu0 %v1737_v43 }
 0x7d9   :  { %776 = vmatpush.msrb.mxu2 %v1735_v42  ;;  %1004 = vmatpush.msra.mxu0 %v1745_v45 }
 0x7db   :  { %777 = vmatpush.msrb.mxu2 %v1743_v44 }
 0x7dd   :  { %778 = vmatpush.msrb.mxu2 %v1751_v46 }
 0x7df   :  { %779 = vmatpush.msrb.mxu2 %v1757_v47 }
 0x7e1   :  { %780 = vmatpush.msrb.mxu2 %v1763_v48 }
 0x84f   :  { %v456_v57 = vpop.f32.mrf.mxu0 }
 0x850   :  { %v460_v59 = vadd.f32 %v456_v57, %v1800_v54 }
 0x855   :  { %v436_v22 = vpop.f32.mrf.mxu2 }
 0x856   :  { %v459_v23 = vadd.f32 %v436_v22, %v1705_v12 }
 0x858   :  { %v462_v24 = vrot.slane %v459_v23, 4 }
 0x85a   :  { %484 = vrot.lane.b32.xlu0 %v462_v24, %s1641_s20  ;;  %v464_v25 = vadd.f32 %v462_v24, %v1712_v17 }
 0x85c   :  { %v1432_v27 = vmul.f32 -1.442695, %v464_v25 }
 0x85e   :  { %1494 = vpow2.f32 %v1432_v27 }
 0x864   :  { %v1495_v28 = vpop.eup %1494 }
 0x865   :  { %v468_v53 = vadd.f32 1.0, %v1495_v28 }
 0x867   :  { %1496 = vrcp.f32 %v468_v53  ;;  %v480_v36 = vand.u32 2147483648, %v468_v53  ;;  %vm474_vm4 = vweird.f32 %v468_v53  ;;  %v478_v49 = vand.u32 2147483647, %v468_v53 }
 0x869   :  { %v481_v51 = vor.u32 1.1754944e-38, %v480_v36  ;;  %vm479_vm7 = vcmp.eq.f32.partialorder %v478_v49, 8.507059e+37 }
 0x86d   :  { %v1497_v29 = vpop.eup %1496 }
 0x86e   :  { %v470_v30 = vmul.f32 %v1497_v29, %v468_v53  ;;  %vm475_vm3 = vweird.f32 %v1497_v29 }
 0x86f   :  { %vm476_vm6 = vmor %vm474_vm4, %vm475_vm3 }
 0x870   :  { %v471_v31 = vsub.f32 1.0, %v470_v30 }
 0x872   :  { %v472_v33 = vmul.f32 %v1497_v29, %v471_v31 }
 0x874   :  { %v473_v35 = vadd.f32 %v1497_v29, %v472_v33 }
 0x876   :  { %v477_v50 = vsel %vm476_vm6, %v1497_v29, %v473_v35 }
 0x877   :  { %v482_v55 = vsel %vm479_vm7, %v481_v51, %v477_v50 }
 0x878   :  { %v494_v63 = vsub.f32 1.0, %v482_v55  ;;  %v502_v5 = vmul.f32 %v500_v3, %v482_v55 }
 0x8cc   :  { %v485_v52 = vpop.permute.xlu0 %484 }
 0x8cd   :  { %v487_v56 = vmul.f32 %v485_v52, %v482_v55 }
 0x8cf   :  { %489 = vrot.lane.b32.xlu1 %v487_v56, %s1641_s20 }
 0x8d7   :  { %551 = vrot.lane.b32.xlu1 %v460_v59, %s1641_s20 }
 0x941   :  { %v490_v60 = vpop.permute.xlu1 %489 }
 0x942   :  { %v492_v61 = vadd.f32 %v490_v60, %v1712_v17 }
 0x944   :  { %1498 = vtanh.f32 %v492_v61 }
 0x949   :  { %v552_v35 = vpop.permute.xlu1 %551 }
 0x94a   :  { %v1499_v62 = vpop.eup %1498 }
 0x94b   :  { %496 = vrot.lane.b32.xlu2 %v1499_v62, %s1642_s21 }
 0x9a5   :  { %v497_v4 = vpop.permute.xlu2 %496 }
 0x9a6   :  { %v499_v11 = vmul.f32 %v497_v4, %v494_v63 }
 0x9a8   :  { %v1897_v13 = vadd.f32 %v502_v5, %v499_v11 }
 0x9aa   :  { %571 = vrot.lane.b32.xlu1 %v1897_v13, %s1642_s21  ;;  %v505_v14 = vrot.slane %v1897_v13, 4 }
 0x9ac   :  { %506 = vrot.lane.b32.xlu0 %v505_v14, %s1642_s21 }
 0xa1c   :  { %v572_v62 = vpop.permute.xlu1 %571 }
 0xa1e   :  { %v507_v18 = vpop.permute.xlu0 %506 }
 0xa1f   :  { %1433 = vmatmul.msk.f32.vlgmr.msra.gmra.mxu1 %vm187_vm5, %v507_v18 }
 0xa20   :  { %906 = vmatpush.msra.mxu1 %v1668_v0 }
 0xa22   :  { %907 = vmatpush.msra.mxu1 %v1670_v1 }
 0xa24   :  { %908 = vmatpush.msra.mxu1 %v1673_v2 }
 0xa26   :  { %909 = vmatpush.msra.mxu1 %v1679_v6 }
 0xa28   :  { %910 = vmatpush.msra.mxu1 %v1682_v7 }
 0xa2a   :  { %911 = vmatpush.msra.mxu1 %v1687_v8 }
 0xa2c   :  { %912 = vmatpush.msra.mxu1 %v1691_v9 }
 0xa2e   :  { %913 = vmatpush.msra.mxu1 %v1695_v10 }
 0xa9c   :  { %v527_v26 = vpop.f32.mrf.mxu1 }
 0xa9d   :  { %v528_v19 = vadd.f32 %v527_v26, %v1813_v58 }
 0xa9f   :  { %v530_v20 = vadd.f32 %v528_v19, %v460_v59 }
 0xaa1   :  { %v1434_v21 = vmul.f32 -1.442695, %v530_v20 }
 0xaa3   :  { %1500 = vpow2.f32 %v1434_v21 }
 0xaa9   :  { %v1501_v22 = vpop.eup %1500 }
 0xaaa   :  { %v534_v23 = vadd.f32 1.0, %v1501_v22 }
 0xaac   :  { %1502 = vrcp.f32 %v534_v23  ;;  %v546_v28 = vand.u32 2147483648, %v534_v23  ;;  %v544_v29 = vand.u32 2147483647, %v534_v23  ;;  %vm540_vm9 = vweird.f32 %v534_v23 }
 0xaae   :  { %v547_v31 = vor.u32 1.1754944e-38, %v546_v28  ;;  %vm545_vm12 = vcmp.eq.f32.partialorder %v544_v29, 8.507059e+37  ;;  %v663_v29 = vrot.slane %v1897_v13, 6 }
 0xab2   :  { %v1503_v24 = vpop.eup %1502 }
 0xab3   :  { %v536_v25 = vmul.f32 %v1503_v24, %v534_v23  ;;  %vm541_vm8 = vweird.f32 %v1503_v24 }
 0xab4   :  { %vm542_vm11 = vmor %vm540_vm9, %vm541_vm8 }
 0xab5   :  { %v537_v27 = vsub.f32 1.0, %v536_v25 }
 0xab7   :  { %v538_v53 = vmul.f32 %v1503_v24, %v537_v27 }
 0xab9   :  { %v539_v30 = vadd.f32 %v1503_v24, %v538_v53 }
 0xabb   :  { %v543_v33 = vsel %vm542_vm11, %v1503_v24, %v539_v30 }
 0xabc   :  { %v548_v36 = vsel %vm545_vm12, %v547_v31, %v543_v33 }
 0xabd   :  { %v554_v49 = vmul.f32 %v552_v35, %v548_v36  ;;  %v561_v55 = vsub.f32 1.0, %v548_v36  ;;  %v567_v57 = vmul.f32 %v548_v36, %v1870_v16 }
 0xabf   :  { %556 = vrot.lane.b32.xlu2 %v554_v49, %s1641_s20 }
 0xb19   :  { %v557_v50 = vpop.permute.xlu2 %556 }
 0xb1a   :  { %v559_v51 = vadd.f32 %v557_v50, %v528_v19 }
 0xb1c   :  { %1504 = vtanh.f32 %v559_v51 }
 0xb22   :  { %v1505_v52 = vpop.eup %1504 }
 0xb23   :  { %563 = vrot.lane.b32.xlu0 %v1505_v52, %s1642_s21 }
 0xb95   :  { %v564_v56 = vpop.permute.xlu0 %563 }
 0xb96   :  { %v566_v59 = vmul.f32 %v564_v56, %v561_v55 }
 0xb98   :  { %v1916_v60 = vadd.f32 %v567_v57, %v566_v59 }
 0xb9a   :  { %v575_v61 = vrot.slane %v1916_v60, 4 }
 0xb9c   :  { %v577_v63 = vsel %vm187_vm5, %v572_v62, %v575_v61 }
 0xb9d   :  { %v579_v3 = vrot.slane %v577_v63, 4 }
 0xb9f   :  { %1435 = vmatmul.msk.f32.vlgmr.msra.gmra.mxu3 %vm99_vm10, %v579_v3  ;;  %1436 = vmatmul.msk.f32.vlgmr.msrb.gmra.mxu1 %vm99_vm10, %v579_v3 }
 0xba0   :  { %926 = vmatpush.msra.mxu3 %v1721_v37  ;;  %1164 = vmatpush.msrb.mxu1 %v1729_v40 }
 0xba2   :  { %927 = vmatpush.msra.mxu3 %v1723_v38  ;;  %1165 = vmatpush.msrb.mxu1 %v1733_v41 }
 0xba4   :  { %928 = vmatpush.msra.mxu3 %v1727_v39  ;;  %1166 = vmatpush.msrb.mxu1 %v1737_v43 }
 0xba6   :  { %929 = vmatpush.msra.mxu3 %v1735_v42  ;;  %1167 = vmatpush.msrb.mxu1 %v1745_v45 }
 0xba8   :  { %930 = vmatpush.msra.mxu3 %v1743_v44 }
 0xbaa   :  { %931 = vmatpush.msra.mxu3 %v1751_v46 }
 0xbac   :  { %932 = vmatpush.msra.mxu3 %v1757_v47 }
 0xbae   :  { %933 = vmatpush.msra.mxu3 %v1763_v48 }
 0xc1c   :  { %v619_v36 = vpop.f32.mrf.mxu1 }
 0xc1d   :  { %v623_v49 = vadd.f32 %v619_v36, %v1800_v54 }
 0xc22   :  { %v599_v4 = vpop.f32.mrf.mxu3 }
 0xc23   :  { %v622_v5 = vadd.f32 %v599_v4, %v1705_v12 }
 0xc25   :  { %v625_v11 = vrot.slane %v622_v5, 2 }
 0xc27   :  { %v627_v14 = vadd.f32 %v625_v11, %v1712_v17  ;;  %647 = vrot.lane.b32.xlu2 %v625_v11, %s1641_s20 }
 0xc29   :  { %v1437_v18 = vmul.f32 -1.442695, %v627_v14 }
 0xc2b   :  { %1506 = vpow2.f32 %v1437_v18 }
 0xc31   :  { %v1507_v26 = vpop.eup %1506 }
 0xc32   :  { %v631_v19 = vadd.f32 1.0, %v1507_v26 }
 0xc34   :  { %1508 = vrcp.f32 %v631_v19  ;;  %v643_v23 = vand.u32 2147483648, %v631_v19  ;;  %v641_v25 = vand.u32 2147483647, %v631_v19  ;;  %vm637_vm14 = vweird.f32 %v631_v19 }
 0xc36   :  { %v644_v28 = vor.u32 1.1754944e-38, %v643_v23  ;;  %vm642_vm0 = vcmp.eq.f32.partialorder %v641_v25, 8.507059e+37 }
 0xc3a   :  { %v1509_v20 = vpop.eup %1508 }
 0xc3b   :  { %v633_v21 = vmul.f32 %v1509_v20, %v631_v19  ;;  %vm638_vm13 = vweird.f32 %v1509_v20 }
 0xc3c   :  { %vm639_vm15 = vmor %vm637_vm14, %vm638_vm13 }
 0xc3d   :  { %v634_v22 = vsub.f32 1.0, %v633_v21 }
 0xc3f   :  { %v635_v24 = vmul.f32 %v1509_v20, %v634_v22 }
 0xc41   :  { %v636_v27 = vadd.f32 %v1509_v20, %v635_v24 }
 0xc43   :  { %v640_v53 = vsel %vm639_vm15, %v1509_v20, %v636_v27 }
 0xc44   :  { %v645_v30 = vsel %vm642_vm0, %v644_v28, %v640_v53 }
 0xc45   :  { %v665_v31 = vmul.f32 %v663_v29, %v645_v30  ;;  %v657_v55 = vsub.f32 1.0, %v645_v30 }
 0xc81   :  { %v648_v33 = vpop.permute.xlu2 %647 }
 0xc82   :  { %v650_v35 = vmul.f32 %v648_v33, %v645_v30 }
 0xc84   :  { %652 = vrot.lane.b32.xlu0 %v650_v35, %s1641_s20 }
 0xc8c   :  { %714 = vrot.lane.b32.xlu0 %v623_v49, %s1641_s20 }
 0xcf6   :  { %v653_v50 = vpop.permute.xlu0 %652 }
 0xcf7   :  { %v655_v51 = vadd.f32 %v653_v50, %v1712_v17 }
 0xcf9   :  { %1510 = vtanh.f32 %v655_v51 }
 0xcfe   :  { %v715_v14 = vpop.permute.xlu0 %714 }
 0xcff   :  { %v1511_v52 = vpop.eup %1510 }
 0xd00   :  { %659 = vrot.lane.b32.xlu1 %v1511_v52, %s1642_s21 }
 0xd72   :  { %v660_v13 = vpop.permute.xlu1 %659 }
 0xd73   :  { %v662_v56 = vmul.f32 %v660_v13, %v657_v55 }
 0xd75   :  { %v1943_v57 = vadd.f32 %v665_v31, %v662_v56 }
 0xd77   :  { %734 = vrot.lane.b32.xlu0 %v1943_v57, %s1642_s21  ;;  %v668_v59 = vrot.slane %v1943_v57, 6  ;;  %v1571_v57 = vld [vmem:[#allocation2 + $0x110] sm:$0xff] }
 0xd79   :  { %669 = vrot.lane.b32.xlu2 %v668_v59, %s1642_s21 }
 0xdd3   :  { %v670_v61 = vpop.permute.xlu2 %669 }
 0xdd4   :  { %1438 = vmatmul.msk.f32.vlgmr.msra.gmra.mxu2 %vm187_vm5, %v670_v61 }
 0xdd5   :  { %1069 = vmatpush.msra.mxu2 %v1668_v0 }
 0xdd7   :  { %1070 = vmatpush.msra.mxu2 %v1670_v1 }
 0xdd9   :  { %1071 = vmatpush.msra.mxu2 %v1673_v2 }
 0xddb   :  { %1072 = vmatpush.msra.mxu2 %v1679_v6 }
 0xddd   :  { %1073 = vmatpush.msra.mxu2 %v1682_v7 }
 0xddf   :  { %1074 = vmatpush.msra.mxu2 %v1687_v8 }
 0xde1   :  { %1075 = vmatpush.msra.mxu2 %v1691_v9 }
 0xde3   :  { %1076 = vmatpush.msra.mxu2 %v1695_v10 }
 0xde9   :  { %v735_v53 = vpop.permute.xlu0 %734 }
 0xe57   :  { %v690_v17 = vpop.f32.mrf.mxu2 }
 0xe58   :  { %v691_v62 = vadd.f32 %v690_v17, %v1813_v58 }
 0xe5a   :  { %v693_v63 = vadd.f32 %v691_v62, %v623_v49 }
 0xe5c   :  { %v1439_v3 = vmul.f32 -1.442695, %v693_v63  ;;  %v1566_v63 = vld [vmem:[#allocation2 + $0x160] sm:$0xff] }
 0xe5e   :  { %1512 = vpow2.f32 %v1439_v3  ;;  %v1567_v3 = vld [vmem:[#allocation2 + $0x150] sm:$0xff] }
 0xe64   :  { %v1513_v0 = vpop.eup %1512 }
 0xe65   :  { %v697_v1 = vadd.f32 1.0, %v1513_v0  ;;  %v1568_v0 = vld [vmem:[#allocation2 + $0x140] sm:$0xff] }
 0xe67   :  { %1514 = vrcp.f32 %v697_v1  ;;  %v709_v5 = vand.u32 2147483648, %v697_v1  ;;  %v707_v8 = vand.u32 2147483647, %v697_v1  ;;  %vm703_vm2 = vweird.f32 %v697_v1 }
 0xe69   :  { %v710_v9 = vor.u32 1.1754944e-38, %v709_v5  ;;  %vm708_vm4 = vcmp.eq.f32.partialorder %v707_v8, 8.507059e+37 }
 0xe6d   :  { %v1515_v2 = vpop.eup %1514 }
 0xe6e   :  { %v699_v4 = vmul.f32 %v1515_v2, %v697_v1  ;;  %vm704_vm1 = vweird.f32 %v1515_v2  ;;  %v1569_v1 = vld [vmem:[#allocation2 + $0x130] sm:$0xff] }
 0xe6f   :  { %vm705_vm3 = vmor %vm703_vm2, %vm704_vm1 }
 0xe70   :  { %v700_v6 = vsub.f32 1.0, %v699_v4  ;;  %v1573_v4 = vld [vmem:[#allocation2 + $0xf0] sm:$0xff] }
 0xe72   :  { %v701_v7 = vmul.f32 %v1515_v2, %v700_v6 }
 0xe74   :  { %v702_v11 = vadd.f32 %v1515_v2, %v701_v7 }
 0xe76   :  { %v706_v10 = vsel %vm705_vm3, %v1515_v2, %v702_v11  ;;  %v1570_v2 = vld [vmem:[#allocation2 + $0x120] sm:$0xff] }
 0xe77   :  { %v711_v18 = vsel %vm708_vm4, %v710_v9, %v706_v10 }
 0xe78   :  { %v717_v26 = vmul.f32 %v715_v14, %v711_v18  ;;  %v724_v22 = vsub.f32 1.0, %v711_v18  ;;  %v730_v24 = vmul.f32 %v711_v18, %v1916_v60 }
 0xe7a   :  { %719 = vrot.lane.b32.xlu1 %v717_v26, %s1641_s20 }
 0xeec   :  { %v720_v19 = vpop.permute.xlu1 %719 }
 0xeed   :  { %v722_v20 = vadd.f32 %v720_v19, %v691_v62 }
 0xeef   :  { %1516 = vtanh.f32 %v722_v20 }
 0xef5   :  { %v1517_v21 = vpop.eup %1516 }
 0xef6   :  { %726 = vrot.lane.b32.xlu2 %v1517_v21, %s1642_s21 }
 0xf50   :  { %v727_v23 = vpop.permute.xlu2 %726 }
 0xf51   :  { %v729_v25 = vmul.f32 %v727_v23, %v724_v22 }
 0xf53   :  { %v1964_v27 = vadd.f32 %v730_v24, %v729_v25 }
 0xf55   :  { %v738_v28 = vrot.slane %v1964_v27, 2 }
 0xf57   :  { %v740_v29 = vsel %vm187_vm5, %v735_v53, %v738_v28 }
 0xf58   :  { %v742_v30 = vrot.slane %v740_v29, 6 }
 0xf5a   :  { %1440 = vmatmul.msk.f32.vlgmr.msrb.gmra.mxu0 %vm99_vm10, %v742_v30  ;;  %1441 = vmatmul.msk.f32.vlgmr.msrb.gmra.mxu2 %vm99_vm10, %v742_v30 }
 0xf5b   :  { %1089 = vmatpush.msrb.mxu0 %v1721_v37  ;;  %1327 = vmatpush.msrb.mxu2 %v1729_v40 }
 0xf5d   :  { %1090 = vmatpush.msrb.mxu0 %v1723_v38  ;;  %1328 = vmatpush.msrb.mxu2 %v1733_v41 }
 0xf5f   :  { %1091 = vmatpush.msrb.mxu0 %v1727_v39  ;;  %1329 = vmatpush.msrb.mxu2 %v1737_v43  ;;  %v1986_v39 = vadd.f32 %v1840_v34, %v1709_v15 }
 0xf61   :  { %1092 = vmatpush.msrb.mxu0 %v1735_v42  ;;  %1330 = vmatpush.msrb.mxu2 %v1745_v45 }
 0xf63   :  { %1093 = vmatpush.msrb.mxu0 %v1743_v44 }
 0xf65   :  { %1094 = vmatpush.msrb.mxu0 %v1751_v46 }
 0xf67   :  { %1095 = vmatpush.msrb.mxu0 %v1757_v47 }
 0xf69   :  { %1096 = vmatpush.msrb.mxu0 %v1763_v48 }
 0xfd7   :  { %v762_v37 = vpop.f32.mrf.mxu0 }
 0xfd8   :  { %v785_v38 = vadd.f32 %v762_v37, %v1705_v12 }
 0xfda   :  { %808 = vrot.lane.b32.xlu1 %v785_v38, %s1641_s20  ;;  %v787_v40 = vadd.f32 %v785_v38, %v1986_v39 }
 0xfdc   :  { %v1442_v41 = vmul.f32 -1.442695, %v787_v40 }
 0xfdd   :  { %v782_v49 = vpop.f32.mrf.mxu2 }
 0xfde   :  { %1518 = vpow2.f32 %v1442_v41  ;;  %v786_v50 = vadd.f32 %v782_v49, %v1800_v54 }
 0xfe4   :  { %v1519_v42 = vpop.eup %1518 }
 0xfe5   :  { %v791_v43 = vadd.f32 1.0, %v1519_v42 }
 0xfe7   :  { %1520 = vrcp.f32 %v791_v43  ;;  %v803_v12 = vand.u32 2147483648, %v791_v43  ;;  %vm797_vm7 = vweird.f32 %v791_v43  ;;  %v801_v31 = vand.u32 2147483647, %v791_v43 }
 0xfe9   :  { %v804_v15 = vor.u32 1.1754944e-38, %v803_v12  ;;  %vm802_vm9 = vcmp.eq.f32.partialorder %v801_v31, 8.507059e+37  ;;  %v1580_v12 = vld [vmem:[#allocation2 + $0x108] sm:$0xff]  ;;  %v1581_v31 = vld [vmem:[#allocation2 + $0xf8] sm:$0xff] }
 0xfed   :  { %v1521_v44 = vpop.eup %1520 }
 0xfee   :  { %v793_v45 = vmul.f32 %v1521_v44, %v791_v43  ;;  %vm798_vm6 = vweird.f32 %v1521_v44  ;;  %v1574_v43 = vld [vmem:[#allocation2 + $0x168] sm:$0xff] }
 0xfef   :  { %vm799_vm8 = vmor %vm797_vm7, %vm798_vm6 }
 0xff0   :  { %v794_v46 = vsub.f32 1.0, %v793_v45  ;;  %v1576_v45 = vld [vmem:[#allocation2 + $0x148] sm:$0xff] }
 0xff2   :  { %v795_v47 = vmul.f32 %v1521_v44, %v794_v46  ;;  %v1577_v46 = vld [vmem:[#allocation2 + $0x138] sm:$0xff] }
 0xff4   :  { %v796_v48 = vadd.f32 %v1521_v44, %v795_v47  ;;  %v1578_v47 = vld [vmem:[#allocation2 + $0x128] sm:$0xff] }
 0xff6   :  { %v800_v33 = vsel %vm799_vm8, %v1521_v44, %v796_v48  ;;  %v1575_v44 = vld [vmem:[#allocation2 + $0x158] sm:$0xff] }
 0xff7   :  { %v805_v35 = vsel %vm802_vm9, %v804_v15, %v800_v33  ;;  %v1579_v48 = vld [vmem:[#allocation2 + $0x118] sm:$0xff]  ;;  %v2011_v15 = vld [vmem:[#allocation2 + $0xb0] ss:$0 sm:$0xff] }
 0xff8   :  { %v818_v13 = vsub.f32 1.0, %v805_v35  ;;  %v825_v61 = vmul.f32 %v805_v35, %v668_v59  ;;  %v1572_v59 = vld [vmem:[#allocation2 + $0x100] sm:$0xff] }
0x104c   :  { %v809_v34 = vpop.permute.xlu1 %808 }
0x104d   :  { %v811_v36 = vmul.f32 %v809_v34, %v805_v35 }
0x104f   :  { %813 = vrot.lane.b32.xlu2 %v811_v36, %s1641_s20 }
0x1057   :  { %873 = vrot.lane.b32.xlu2 %v786_v50, %s1641_s20 }
0x10a9   :  { %v814_v51 = vpop.permute.xlu2 %813 }
0x10aa   :  { %v816_v52 = vadd.f32 %v814_v51, %v1986_v39 }
0x10ac   :  { %1522 = vtanh.f32 %v816_v52 }
0x10b2   :  { %v1523_v55 = vpop.eup %1522 }
0x10b3   :  { %820 = vrot.lane.b32.xlu0 %v1523_v55, %s1642_s21 }
0x1125   :  { %v821_v56 = vpop.permute.xlu0 %820 }
0x1126   :  { %v823_v17 = vmul.f32 %v821_v56, %v818_v13 }
0x1128   :  { %v1996_v62 = vadd.f32 %v825_v61, %v823_v17 }
0x112a   :  { %828 = vrot.lane.b32.xlu1 %v1996_v62, %s1642_s21 }
0x119c   :  { %v829_v54 = vpop.permute.xlu1 %828 }
0x119d   :  { %1443 = vmatmul.msk.f32.vlgmr.msrb.gmra.mxu3 %vm187_vm5, %v829_v54 }
0x119e   :  { %1232 = vmatpush.msrb.mxu3 %v1566_v63 }
0x11a0   :  { %1233 = vmatpush.msrb.mxu3 %v1567_v3  ;;  %v979_v3 = vrot.slane %v1996_v62, 6 }
0x11a2   :  { %1234 = vmatpush.msrb.mxu3 %v1568_v0 }
0x11a4   :  { %1235 = vmatpush.msrb.mxu3 %v1569_v1 }
0x11a6   :  { %1236 = vmatpush.msrb.mxu3 %v1570_v2 }
0x11a8   :  { %1237 = vmatpush.msrb.mxu3 %v1571_v57 }
0x11aa   :  { %1238 = vmatpush.msrb.mxu3 %v1572_v59 }
0x11ac   :  { %1239 = vmatpush.msrb.mxu3 %v1573_v4 }
0x1220   :  { %v849_v6 = vpop.f32.mrf.mxu3 }
0x1221   :  { %v850_v5 = vadd.f32 %v849_v6, %v1813_v58  ;;  %v874_v58 = vpop.permute.xlu2 %873  ;;  %v2018_v6 = vld [vmem:[#allocation2 + $0xd0] ss:$0 sm:$0xff] }
0x1223   :  { %v852_v7 = vadd.f32 %v850_v5, %v786_v50 }
0x1225   :  { %v1444_v8 = vmul.f32 -1.442695, %v852_v7 }
0x1227   :  { %1524 = vpow2.f32 %v1444_v8 }
0x122d   :  { %v1525_v11 = vpop.eup %1524 }
0x122e   :  { %v856_v9 = vadd.f32 1.0, %v1525_v11 }
0x1230   :  { %1526 = vrcp.f32 %v856_v9  ;;  %v868_v26 = vand.u32 2147483648, %v856_v9  ;;  %v866_v20 = vand.u32 2147483647, %v856_v9  ;;  %vm862_vm12 = vweird.f32 %v856_v9 }
0x1232   :  { %v869_v22 = vor.u32 1.1754944e-38, %v868_v26  ;;  %vm867_vm14 = vcmp.eq.f32.partialorder %v866_v20, 8.507059e+37  ;;  %v2031_v20 = vld [vmem:[#allocation2 + $0xc0] ss:$0 sm:$0xff] }
0x1236   :  { %v1527_v10 = vpop.eup %1526 }
0x1237   :  { %v858_v14 = vmul.f32 %v1527_v10, %v856_v9  ;;  %vm863_vm11 = vweird.f32 %v1527_v10 }
0x1238   :  { %vm864_vm13 = vmor %vm862_vm12, %vm863_vm11 }
0x1239   :  { %v859_v18 = vsub.f32 1.0, %v858_v14 }
0x123b   :  { %v860_v19 = vmul.f32 %v1527_v10, %v859_v18 }
0x123d   :  { %v861_v21 = vadd.f32 %v1527_v10, %v860_v19 }
0x123f   :  { %v865_v23 = vsel %vm864_vm13, %v1527_v10, %v861_v21 }
0x1240   :  { %v870_v24 = vsel %vm867_vm14, %v869_v22, %v865_v23 }
0x1241   :  { %v876_v25 = vmul.f32 %v874_v58, %v870_v24  ;;  %v883_v30 = vsub.f32 1.0, %v870_v24  ;;  %v889_v38 = vmul.f32 %v870_v24, %v1964_v27 }
0x1243   :  { %878 = vrot.lane.b32.xlu0 %v876_v25, %s1641_s20 }
0x12b5   :  { %v879_v28 = vpop.permute.xlu0 %878 }
0x12b6   :  { %v881_v53 = vadd.f32 %v879_v28, %v850_v5 }
0x12b8   :  { %1528 = vtanh.f32 %v881_v53 }
0x12be   :  { %v1529_v29 = vpop.eup %1528 }
0x12bf   :  { %885 = vrot.lane.b32.xlu1 %v1529_v29, %s1642_s21 }
0x1331   :  { %v886_v37 = vpop.permute.xlu1 %885 }
0x1332   :  { %v888_v40 = vmul.f32 %v886_v37, %v883_v30 }
0x1334   :  { %v2005_v41 = vadd.f32 %v889_v38, %v888_v40 }
0x1336   :  { %v894_v42 = vsel %vm187_vm5, %v829_v54, %v2005_v41 }
0x1337   :  { %1445 = vmatmul.msk.f32.vlgmr.msra.gmra.mxu1 %vm99_vm10, %v894_v42  ;;  %1446 = vmatmul.msk.f32.vlgmr.msra.gmra.mxu3 %vm99_vm10, %v894_v42 }
0x1338   :  { %1252 = vmatpush.msra.mxu1 %v1574_v43 }
0x133a   :  { %1253 = vmatpush.msra.mxu1 %v1575_v44 }
0x133c   :  { %1254 = vmatpush.msra.mxu1 %v1576_v45 }
0x133e   :  { %1255 = vmatpush.msra.mxu1 %v1577_v46 }
0x1340   :  { %1256 = vmatpush.msra.mxu1 %v1578_v47 }
0x1342   :  { %1257 = vmatpush.msra.mxu1 %v1579_v48 }
0x1344   :  { %1258 = vmatpush.msra.mxu1 %v1580_v12 }
0x1346   :  { %1259 = vmatpush.msra.mxu1 %v1581_v31 }
0x13b4   :  { %v915_v33 = vpop.f32.mrf.mxu1 }
0x13b5   :  { %v938_v34 = vadd.f32 %v2011_v15, %v915_v33 }
0x13b7   :  { %v941_v35 = vrot.slane %v938_v34, 6 }
0x13b9   :  { %v943_v36 = vadd.f32 %v941_v35, %v1986_v39  ;;  %963 = vrot.lane.b32.xlu2 %v941_v35, %s1641_s20 }
0x13ba   :  { %v935_v4 = vpop.f32.mrf.mxu3 }
0x13bb   :  { %v1447_v49 = vmul.f32 -1.442695, %v943_v36  ;;  %v939_v5 = vadd.f32 %v2018_v6, %v935_v4 }
0x13bd   :  { %1530 = vpow2.f32 %v1447_v49 }
0x13c3   :  { %v1531_v50 = vpop.eup %1530 }
0x13c4   :  { %v947_v51 = vadd.f32 1.0, %v1531_v50 }
0x13c6   :  { %1532 = vrcp.f32 %v947_v51  ;;  %v959_v56 = vand.u32 2147483648, %v947_v51  ;;  %v957_v17 = vand.u32 2147483647, %v947_v51  ;;  %vm953_vm0 = vweird.f32 %v947_v51 }
0x13c8   :  { %v960_v63 = vor.u32 1.1754944e-38, %v959_v56  ;;  %vm958_vm2 = vcmp.eq.f32.partialorder %v957_v17, 8.507059e+37 }
0x13cc   :  { %v1533_v52 = vpop.eup %1532 }
0x13cd   :  { %v949_v55 = vmul.f32 %v1533_v52, %v947_v51  ;;  %vm954_vm15 = vweird.f32 %v1533_v52 }
0x13ce   :  { %vm955_vm1 = vmor %vm953_vm0, %vm954_vm15 }
0x13cf   :  { %v950_v13 = vsub.f32 1.0, %v949_v55 }
0x13d1   :  { %v951_v61 = vmul.f32 %v1533_v52, %v950_v13 }
0x13d3   :  { %v952_v54 = vadd.f32 %v1533_v52, %v951_v61 }
0x13d5   :  { %v956_v0 = vsel %vm955_vm1, %v1533_v52, %v952_v54 }
0x13d6   :  { %v961_v1 = vsel %vm958_vm2, %v960_v63, %v956_v0 }
0x13d7   :  { %v981_v2 = vmul.f32 %v979_v3, %v961_v1  ;;  %v973_v11 = vsub.f32 1.0, %v961_v1 }
0x1413   :  { %v964_v57 = vpop.permute.xlu2 %963 }
0x1414   :  { %v966_v59 = vmul.f32 %v964_v57, %v961_v1 }
0x1416   :  { %968 = vrot.lane.b32.xlu0 %v966_v59, %s1641_s20 }
0x141e   :  { %1030 = vrot.lane.b32.xlu0 %v939_v5, %s1641_s20 }
0x1488   :  { %v969_v7 = vpop.permute.xlu0 %968 }
0x1489   :  { %v971_v8 = vadd.f32 %v969_v7, %v1986_v39 }
0x148b   :  { %1534 = vtanh.f32 %v971_v8 }
0x1490   :  { %v1031_v43 = vpop.permute.xlu0 %1030 }
0x1491   :  { %v1535_v62 = vpop.eup %1534 }
0x1492   :  { %975 = vrot.lane.b32.xlu1 %v1535_v62, %s1642_s21 }
0x1504   :  { %v976_v9 = vpop.permute.xlu1 %975 }
0x1505   :  { %v978_v10 = vmul.f32 %v976_v9, %v973_v11 }
0x1507   :  { %v2024_v14 = vadd.f32 %v981_v2, %v978_v10 }
0x1509   :  { %1050 = vrot.lane.b32.xlu0 %v2024_v14, %s1642_s21  ;;  %v984_v18 = vrot.slane %v2024_v14, 2 }
0x150b   :  { %985 = vrot.lane.b32.xlu2 %v984_v18, %s1642_s21 }
0x1565   :  { %v986_v26 = vpop.permute.xlu2 %985 }
0x1566   :  { %1448 = vmatmul.msk.f32.vlgmr.msra.gmra.mxu0 %vm187_vm5, %v986_v26 }
0x157b   :  { %v1051_v49 = vpop.permute.xlu0 %1050 }
0x15e3   :  { %v1006_v19 = vpop.f32.mrf.mxu0 }
0x15e4   :  { %v1007_v21 = vadd.f32 %v2031_v20, %v1006_v19 }
0x15e6   :  { %v1009_v22 = vadd.f32 %v1007_v21, %v939_v5 }
0x15e8   :  { %v1449_v23 = vmul.f32 -1.442695, %v1009_v22 }
0x15ea   :  { %1536 = vpow2.f32 %v1449_v23 }
0x15f0   :  { %v1537_v58 = vpop.eup %1536 }
0x15f1   :  { %v1013_v24 = vadd.f32 1.0, %v1537_v58 }
0x15f3   :  { %1538 = vrcp.f32 %v1013_v24  ;;  %v1025_v29 = vand.u32 2147483648, %v1013_v24  ;;  %v1023_v37 = vand.u32 2147483647, %v1013_v24  ;;  %vm1019_vm4 = vweird.f32 %v1013_v24 }
0x15f5   :  { %v1026_v40 = vor.u32 1.1754944e-38, %v1025_v29  ;;  %vm1024_vm7 = vcmp.eq.f32.partialorder %v1023_v37, 8.507059e+37 }
0x15f9   :  { %v1539_v25 = vpop.eup %1538 }
0x15fa   :  { %v1015_v28 = vmul.f32 %v1539_v25, %v1013_v24  ;;  %vm1020_vm3 = vweird.f32 %v1539_v25 }
0x15fb   :  { %vm1021_vm6 = vmor %vm1019_vm4, %vm1020_vm3 }
0x15fc   :  { %v1016_v53 = vsub.f32 1.0, %v1015_v28 }
0x15fe   :  { %v1017_v30 = vmul.f32 %v1539_v25, %v1016_v53 }
0x1600   :  { %v1018_v38 = vadd.f32 %v1539_v25, %v1017_v30 }
0x1602   :  { %v1022_v42 = vsel %vm1021_vm6, %v1539_v25, %v1018_v38 }
0x1603   :  { %v1027_v44 = vsel %vm1024_vm7, %v1026_v40, %v1022_v42 }
0x1604   :  { %v1033_v45 = vmul.f32 %v1031_v43, %v1027_v44  ;;  %v1040_v12 = vsub.f32 1.0, %v1027_v44  ;;  %v1046_v33 = vmul.f32 %v1027_v44, %v2005_v41 }
0x1606   :  { %1035 = vrot.lane.b32.xlu1 %v1033_v45, %s1641_s20 }
0x1678   :  { %v1036_v46 = vpop.permute.xlu1 %1035 }
0x1679   :  { %v1038_v47 = vadd.f32 %v1036_v46, %v1007_v21  ;;  %v1142_v21 = vrot.slane %v2024_v14, 6 }
0x167b   :  { %1540 = vtanh.f32 %v1038_v47 }
0x1681   :  { %v1541_v48 = vpop.eup %1540 }
0x1682   :  { %1042 = vrot.lane.b32.xlu2 %v1541_v48, %s1642_s21 }
0x16dc   :  { %v1043_v31 = vpop.permute.xlu2 %1042 }
0x16dd   :  { %v1045_v34 = vmul.f32 %v1043_v31, %v1040_v12 }
0x16df   :  { %v2037_v35 = vadd.f32 %v1046_v33, %v1045_v34 }
0x16e1   :  { %v1054_v36 = vrot.slane %v2037_v35, 6 }
0x16e3   :  { %v1056_v50 = vsel %vm187_vm5, %v1051_v49, %v1054_v36 }
0x16e4   :  { %v1058_v51 = vrot.slane %v1056_v50, 2 }
0x16e6   :  { %1450 = vmatmul.msk.f32.vlgmr.msra.gmra.mxu2 %vm99_vm10, %v1058_v51  ;;  %1451 = vmatmul.msk.f32.vlgmr.msrb.gmra.mxu0 %vm99_vm10, %v1058_v51 }
0x1763   :  { %v1098_v11 = vpop.f32.mrf.mxu0 }
0x1764   :  { %v1102_v9 = vadd.f32 %v2018_v6, %v1098_v11 }
0x1769   :  { %v1078_v52 = vpop.f32.mrf.mxu2 }
0x176a   :  { %v1101_v55 = vadd.f32 %v2011_v15, %v1078_v52 }
0x176c   :  { %v1104_v13 = vrot.slane %v1101_v55, 4 }
0x176e   :  { %1126 = vrot.lane.b32.xlu1 %v1104_v13, %s1641_s20  ;;  %v1106_v56 = vadd.f32 %v1104_v13, %v1986_v39 }
0x1770   :  { %v1452_v61 = vmul.f32 -1.442695, %v1106_v56 }
0x1772   :  { %1542 = vpow2.f32 %v1452_v61 }
0x1778   :  { %v1543_v17 = vpop.eup %1542 }
0x1779   :  { %v1110_v54 = vadd.f32 1.0, %v1543_v17 }
0x177b   :  { %1544 = vrcp.f32 %v1110_v54  ;;  %v1122_v57 = vand.u32 2147483648, %v1110_v54  ;;  %vm1116_vm9 = vweird.f32 %v1110_v54  ;;  %v1120_v59 = vand.u32 2147483647, %v1110_v54 }
0x177d   :  { %v1123_v5 = vor.u32 1.1754944e-38, %v1122_v57  ;;  %vm1121_vm12 = vcmp.eq.f32.partialorder %v1120_v59, 8.507059e+37 }
0x1781   :  { %v1545_v63 = vpop.eup %1544 }
0x1782   :  { %v1112_v3 = vmul.f32 %v1545_v63, %v1110_v54  ;;  %vm1117_vm8 = vweird.f32 %v1545_v63 }
0x1783   :  { %vm1118_vm11 = vmor %vm1116_vm9, %vm1117_vm8 }
0x1784   :  { %v1113_v0 = vsub.f32 1.0, %v1112_v3 }
0x1786   :  { %v1114_v1 = vmul.f32 %v1545_v63, %v1113_v0 }
0x1788   :  { %v1115_v2 = vadd.f32 %v1545_v63, %v1114_v1 }
0x178a   :  { %v1119_v4 = vsel %vm1118_vm11, %v1545_v63, %v1115_v2 }
0x178b   :  { %v1124_v8 = vsel %vm1121_vm12, %v1123_v5, %v1119_v4 }
0x178c   :  { %v1136_v19 = vsub.f32 1.0, %v1124_v8  ;;  %v1144_v23 = vmul.f32 %v1142_v21, %v1124_v8 }
0x17e0   :  { %v1127_v7 = vpop.permute.xlu1 %1126 }
0x17e1   :  { %v1129_v62 = vmul.f32 %v1127_v7, %v1124_v8 }
0x17e3   :  { %1131 = vrot.lane.b32.xlu2 %v1129_v62, %s1641_s20 }
0x17eb   :  { %1193 = vrot.lane.b32.xlu2 %v1102_v9, %s1641_s20 }
0x183d   :  { %v1132_v10 = vpop.permute.xlu2 %1131 }
0x183e   :  { %v1134_v18 = vadd.f32 %v1132_v10, %v1986_v39 }
0x1840   :  { %1546 = vtanh.f32 %v1134_v18 }
0x1845   :  { %v1194_v31 = vpop.permute.xlu2 %1193 }
0x1846   :  { %v1547_v26 = vpop.eup %1546 }
0x1847   :  { %1138 = vrot.lane.b32.xlu0 %v1547_v26, %s1642_s21 }
0x18b9   :  { %v1139_v22 = vpop.permute.xlu0 %1138 }
0x18ba   :  { %v1141_v58 = vmul.f32 %v1139_v22, %v1136_v19 }
0x18bc   :  { %v2052_v24 = vadd.f32 %v1144_v23, %v1141_v58 }
0x18be   :  { %1213 = vrot.lane.b32.xlu2 %v2052_v24, %s1642_s21  ;;  %v1147_v25 = vrot.slane %v2052_v24, 4 }
0x18c0   :  { %1148 = vrot.lane.b32.xlu1 %v1147_v25, %s1642_s21 }
0x1918   :  { %v1214_v17 = vpop.permute.xlu2 %1213 }
0x1932   :  { %v1149_v28 = vpop.permute.xlu1 %1148 }
0x1933   :  { %1453 = vmatmul.msk.f32.vlgmr.msrb.gmra.mxu1 %vm187_vm5, %v1149_v28 }
0x19b0   :  { %v1169_v53 = vpop.f32.mrf.mxu1 }
0x19b1   :  { %v1170_v29 = vadd.f32 %v2031_v20, %v1169_v53  ;;  %v1643_v53 = vmov 0  }
0x19b2   :  { %1469 = vset.pattern.permute.xlu0 %v1643_v53 }
0x19b3   :  { %v1172_v30 = vadd.f32 %v1170_v29, %v1102_v9 }
0x19b5   :  { %v1454_v14 = vmul.f32 -1.442695, %v1172_v30  ;;  %v1305_v30 = vrot.slane %v2052_v24, 6 }
0x19b7   :  { %1548 = vpow2.f32 %v1454_v14 }
0x19bd   :  { %v1549_v37 = vpop.eup %1548 }
0x19be   :  { %v1176_v38 = vadd.f32 1.0, %v1549_v37 }
0x19c0   :  { %1550 = vrcp.f32 %v1176_v38  ;;  %v1188_v44 = vand.u32 2147483648, %v1176_v38  ;;  %v1186_v46 = vand.u32 2147483647, %v1176_v38  ;;  %vm1182_vm14 = vweird.f32 %v1176_v38 }
0x19c2   :  { %v1189_v48 = vor.u32 1.1754944e-38, %v1188_v44  ;;  %vm1187_vm0 = vcmp.eq.f32.partialorder %v1186_v46, 8.507059e+37 }
0x19c6   :  { %v1551_v40 = vpop.eup %1550 }
0x19c7   :  { %v1178_v42 = vmul.f32 %v1551_v40, %v1176_v38  ;;  %vm1183_vm13 = vweird.f32 %v1551_v40 }
0x19c8   :  { %vm1184_vm15 = vmor %vm1182_vm14, %vm1183_vm13 }
0x19c9   :  { %v1179_v43 = vsub.f32 1.0, %v1178_v42 }
0x19cb   :  { %v1180_v45 = vmul.f32 %v1551_v40, %v1179_v43 }
0x19cd   :  { %v1181_v47 = vadd.f32 %v1551_v40, %v1180_v45 }
0x19cf   :  { %v1185_v12 = vsel %vm1184_vm15, %v1551_v40, %v1181_v47 }
0x19d0   :  { %v1190_v33 = vsel %vm1187_vm0, %v1189_v48, %v1185_v12 }
0x19d1   :  { %v1196_v34 = vmul.f32 %v1194_v31, %v1190_v33  ;;  %v1203_v51 = vsub.f32 1.0, %v1190_v33  ;;  %v1209_v55 = vmul.f32 %v1190_v33, %v2037_v35 }
0x19d3   :  { %1198 = vrot.lane.b32.xlu0 %v1196_v34, %s1641_s20 }
0x1a45   :  { %v1199_v36 = vpop.permute.xlu0 %1198 }
0x1a46   :  { %v1201_v49 = vadd.f32 %v1199_v36, %v1170_v29 }
0x1a48   :  { %1552 = vtanh.f32 %v1201_v49 }
0x1a4e   :  { %v1553_v50 = vpop.eup %1552 }
0x1a4f   :  { %1205 = vrot.lane.b32.xlu1 %v1553_v50, %s1642_s21 }
0x1ac1   :  { %v1206_v52 = vpop.permute.xlu1 %1205 }
0x1ac2   :  { %v1208_v13 = vmul.f32 %v1206_v52, %v1203_v51 }
0x1ac4   :  { %v2063_v56 = vadd.f32 %v1209_v55, %v1208_v13 }
0x1ac6   :  { %v1217_v61 = vrot.slane %v2063_v56, 4 }
0x1ac8   :  { %v1219_v54 = vsel %vm187_vm5, %v1214_v17, %v1217_v61 }
0x1ac9   :  { %v1221_v63 = vrot.slane %v1219_v54, 4 }
0x1acb   :  { %1455 = vmatmul.msk.f32.vlgmr.msrb.gmra.mxu3 %vm99_vm10, %v1221_v63  ;;  %1456 = vmatmul.msk.f32.vlgmr.msra.gmra.mxu1 %vm99_vm10, %v1221_v63  ;;  %v40_v63 = vld [vmem:[#allocation2 + $0x90] sm:$0xff] }
0x1acc   :  { %1393 = vmatpush.msra.mxu0 %v40_v63 }
0x1b48   :  { %v1261_v22 = vpop.f32.mrf.mxu1 }
0x1b49   :  { %v1265_v23 = vadd.f32 %v2018_v6, %v1261_v22 }
0x1b4e   :  { %v1241_v3 = vpop.f32.mrf.mxu3 }
0x1b4f   :  { %v1264_v0 = vadd.f32 %v2011_v15, %v1241_v3  ;;  %v39_v3 = vld [vmem:[#allocation2 + $0x80] sm:$0xff] }
0x1b50   :  { %1394 = vmatpush.msra.mxu0 %v39_v3 }
0x1b51   :  { %v1267_v1 = vrot.slane %v1264_v0, 2  ;;  %v38_v0 = vld [vmem:[#allocation2 + $0x70] sm:$0xff] }
0x1b52   :  { %1395 = vmatpush.msra.mxu0 %v38_v0 }
0x1b53   :  { %1289 = vrot.lane.b32.xlu0 %v1267_v1, %s1641_s20  ;;  %v1269_v2 = vadd.f32 %v1267_v1, %v1986_v39  ;;  %v37_v1 = vld [vmem:[#allocation2 + $0x60] sm:$0xff] }
0x1b54   :  { %1396 = vmatpush.msra.mxu0 %v37_v1 }
0x1b55   :  { %v1457_v57 = vmul.f32 -1.442695, %v1269_v2 }
0x1b57   :  { %1554 = vpow2.f32 %v1457_v57 }
0x1b5d   :  { %v1555_v59 = vpop.eup %1554 }
0x1b5e   :  { %v1273_v4 = vadd.f32 1.0, %v1555_v59 }
0x1b60   :  { %1556 = vrcp.f32 %v1273_v4  ;;  %v1285_v9 = vand.u32 2147483648, %v1273_v4  ;;  %vm1279_vm10 = vweird.f32 %v1273_v4  ;;  %v1283_v10 = vand.u32 2147483647, %v1273_v4 }
0x1b62   :  { %v1286_v18 = vor.u32 1.1754944e-38, %v1285_v9  ;;  %vm1284_vm3 = vcmp.eq.f32.partialorder %v1283_v10, 8.507059e+37 }
0x1b66   :  { %v1557_v5 = vpop.eup %1556 }
0x1b67   :  { %v1275_v7 = vmul.f32 %v1557_v5, %v1273_v4  ;;  %vm1280_vm1 = vweird.f32 %v1557_v5 }
0x1b68   :  { %vm1281_vm2 = vmor %vm1279_vm10, %vm1280_vm1 }
0x1b69   :  { %v1276_v8 = vsub.f32 1.0, %v1275_v7 }
0x1b6b   :  { %v1277_v62 = vmul.f32 %v1557_v5, %v1276_v8 }
0x1b6d   :  { %v1278_v11 = vadd.f32 %v1557_v5, %v1277_v62 }
0x1b6f   :  { %v1282_v15 = vsel %vm1281_vm2, %v1557_v5, %v1278_v11 }
0x1b70   :  { %v1287_v19 = vsel %vm1284_vm3, %v1286_v18, %v1282_v15 }
0x1b71   :  { %v1299_v29 = vsub.f32 1.0, %v1287_v19  ;;  %v1307_v37 = vmul.f32 %v1305_v30, %v1287_v19 }
0x1bc5   :  { %v1290_v26 = vpop.permute.xlu0 %1289 }
0x1bc6   :  { %v1292_v21 = vmul.f32 %v1290_v26, %v1287_v19 }
0x1bc8   :  { %1294 = vrot.lane.b32.xlu1 %v1292_v21, %s1641_s20 }
0x1bd0   :  { %1356 = vrot.lane.b32.xlu1 %v1265_v23, %s1641_s20 }
0x1c3a   :  { %v1295_v58 = vpop.permute.xlu1 %1294 }
0x1c3b   :  { %v1297_v25 = vadd.f32 %v1295_v58, %v1986_v39  ;;  %v62_v39 = vld [vmem:[%s2100_s1] sm:$0x3]  ;;  %s1644_s1 = smov [#allocation5]  }
0x1c3c   :  { %v1419_v6 = vadd.s32 4294967295, %v62_v39  ;;  %s1407_s25 = sshll.u32 %s1644_s1, 4  ;;  %s1408_s25 = int_to_ptr.vmem [resolvable:$true] %s1407_s25 }
0x1c3d   :  { %1558 = vtanh.f32 %v1297_v25 }
0x1c43   :  { %v1559_v28 = vpop.eup %1558 }
0x1c44   :  { %1301 = vrot.lane.b32.xlu2 %v1559_v28, %s1642_s21 }
0x1c9e   :  { %v1302_v14 = vpop.permute.xlu2 %1301 }
0x1c9f   :  { %v1304_v38 = vmul.f32 %v1302_v14, %v1299_v29 }
0x1ca1   :  { %v1308_v40 = vadd.f32 %v1307_v37, %v1304_v38 }
0x1ca3   :  { %v1310_v42 = vrot.slane %v1308_v40, 6 }
0x1ca5   :  { %1311 = vrot.lane.b32.xlu0 %v1310_v42, %s1642_s21 }
0x1cad   :  { %65 = vperm.xlu0 %1469, %v1419_v6  }
0x1d17   :  { %v1312_v43 = vpop.permute.xlu0 %1311 }
0x1d18   :  { %1458 = vmatmul.msk.f32.vlgmr.msrb.gmra.mxu2 %vm187_vm5, %v1312_v43 }
0x1d1f   :  { %v66_v2 = vpop.permute.xlu0 %65 }
0x1d20   :  { %vm249_vm9 = vcmp.eq.s32.totalorder %v66_v2, 0  ;;  %vm406_vm11 = vcmp.eq.s32.totalorder %v66_v2, 1  ;;  %vm569_vm12 = vcmp.eq.s32.totalorder %v66_v2, 2  ;;  %vm732_vm13 = vcmp.eq.s32.totalorder %v66_v2, 3 }
0x1d21   :  { %v250_v57 = vsel %vm249_vm9, %v1822_v32, 0.0  ;;  %vm891_vm14 = vcmp.eq.s32.totalorder %v66_v2, 4  ;;  %vm1048_vm15 = vcmp.eq.s32.totalorder %v66_v2, 5  ;;  %vm1211_vm0 = vcmp.eq.s32.totalorder %v66_v2, 6 }
0x1d22   :  { %v407_v59 = vsel %vm406_vm11, %v1870_v16, %v250_v57  ;;  %vm1374_vm1 = vcmp.eq.s32.totalorder %v66_v2, 7 }
0x1d23   :  { %v570_v4 = vsel %vm569_vm12, %v1916_v60, %v407_v59 }
0x1d24   :  { %v733_v5 = vsel %vm732_vm13, %v1964_v27, %v570_v4 }
0x1d25   :  { %v892_v7 = vsel %vm891_vm14, %v2005_v41, %v733_v5  ;;  %v42_v41 = vld [vmem:[#allocation2 + $0xe0] ss:$0 sm:$0xff] }
0x1d26   :  { %v1049_v32 = vsel %vm1048_vm15, %v2037_v35, %v892_v7 }
0x1d27   :  { %v1212_v16 = vsel %vm1211_vm0, %v2063_v56, %v1049_v32 }
0x1d9b   :  { %v1332_v44 = vpop.f32.mrf.mxu2 }
0x1d9c   :  { %v1333_v45 = vadd.f32 %v2031_v20, %v1332_v44  ;;  %v1357_v20 = vpop.permute.xlu1 %1356 }
0x1d9e   :  { %v1335_v24 = vadd.f32 %v1333_v45, %v1265_v23 }
0x1da0   :  { %v1459_v46 = vmul.f32 -1.442695, %v1335_v24 }
0x1da2   :  { %1560 = vpow2.f32 %v1459_v46 }
0x1da8   :  { %v1561_v47 = vpop.eup %1560 }
0x1da9   :  { %v1339_v48 = vadd.f32 1.0, %v1561_v47 }
0x1dab   :  { %1562 = vrcp.f32 %v1339_v48  ;;  %v1351_v34 = vand.u32 2147483648, %v1339_v48  ;;  %v1349_v49 = vand.u32 2147483647, %v1339_v48  ;;  %vm1345_vm6 = vweird.f32 %v1339_v48 }
0x1dad   :  { %v1352_v51 = vor.u32 1.1754944e-38, %v1351_v34  ;;  %vm1350_vm8 = vcmp.eq.f32.partialorder %v1349_v49, 8.507059e+37 }
0x1db1   :  { %v1563_v12 = vpop.eup %1562 }
0x1db2   :  { %v1341_v31 = vmul.f32 %v1563_v12, %v1339_v48  ;;  %vm1346_vm4 = vweird.f32 %v1563_v12 }
0x1db3   :  { %vm1347_vm7 = vmor %vm1345_vm6, %vm1346_vm4 }
0x1db4   :  { %v1342_v33 = vsub.f32 1.0, %v1341_v31 }
0x1db6   :  { %v1343_v36 = vmul.f32 %v1563_v12, %v1342_v33 }
0x1db8   :  { %v1344_v50 = vadd.f32 %v1563_v12, %v1343_v36 }
0x1dba   :  { %v1348_v52 = vsel %vm1347_vm7, %v1563_v12, %v1344_v50 }
0x1dbb   :  { %v1353_v55 = vsel %vm1350_vm8, %v1352_v51, %v1348_v52 }
0x1dbc   :  { %v1359_v13 = vmul.f32 %v1357_v20, %v1353_v55  ;;  %v1366_v8 = vsub.f32 1.0, %v1353_v55  ;;  %v1372_v11 = vmul.f32 %v1353_v55, %v2063_v56 }
0x1dbe   :  { %1361 = vrot.lane.b32.xlu2 %v1359_v13, %s1641_s20 }
0x1e18   :  { %v1362_v61 = vpop.permute.xlu2 %1361 }
0x1e19   :  { %v1364_v17 = vadd.f32 %v1362_v61, %v1333_v45 }
0x1e1b   :  { %1564 = vtanh.f32 %v1364_v17 }
0x1e21   :  { %v1565_v54 = vpop.eup %1564 }
0x1e22   :  { %1368 = vrot.lane.b32.xlu1 %v1565_v54, %s1642_s21 }
0x1e94   :  { %v1369_v62 = vpop.permute.xlu1 %1368 }
0x1e95   :  { %v1371_v9 = vmul.f32 %v1369_v62, %v1366_v8 }
0x1e97   :  { %v1373_v10 = vadd.f32 %v1372_v11, %v1371_v9 }
0x1e99   :  { %v1375_v60 = vsel %vm1374_vm1, %v1373_v10, %v1212_v16 }
0x1e9a   :  { %1377 = vrot.lane.b32.xlu2 %v1375_v60, %s1642_s21 }
0x1ef4   :  { %v1378_v27 = vpop.permute.xlu2 %1377 }
0x1ef5   :  { %1460 = vmatmul.msk.f32.vlgmr.msra.gmra.mxu0 %vm187_vm5, %v1378_v27 }
0x1f72   :  { %v1398_v15 = vpop.f32.mrf.mxu0 }
0x1f73   :  { %v1399_v35 = vadd.f32 %v1398_v15, %v42_v41 }
0x1f75   :  { %1401 = vst [vmem:[#allocation5] sm:$0x3] %v1399_v35 }
0x1f76   :  { %1412 = dma.vmem_to_hbm [thread:$0]  %s1408_s25, 32, %s1410_s28, [#allocation4]  }
0x1f77   :  { %1635 = dma.done.wait [#allocation4], 32  }
0x1f78   :  { %1636 = vsyncadd [#allocation4], 4294967264 }
0x1f79   :  { %1417 = vsyncpa [#allocation3], 1 }
0x1f7a   :  { %1418 = vsyncpa [#allocation4], 1 }

</bundles_post_ra>
